<compile_context>
chip_gen: v5e
topology: v5e:2x2
jax: 0.10.0
libtpu: 0.0.40
codegen_flags: <defaults>
</compile_context>

<pallas_src>
import math

import numpy as np
import jax
import jax.numpy as jnp
from jax import lax
from jax.experimental import pallas as pl
from jax.experimental.pallas import tpu as pltpu

# ---------------- config (small, consistent with the module) ----------------
B = 2            # batch
SEQ_LEN = 8      # configs.seq_len
PRED_LEN = 8     # configs.pred_len
ENC_IN = 4       # configs.enc_in  (channels C)
D_MODEL = 8      # configs.d_model
D_HID = D_MODEL * ENC_IN     # 32 = d_model * enc_in (QKV / conv1 hidden width)
EPS_LN = 1e-5    # nn.LayerNorm default eps
EPS_RN = 1e-5    # Normalize (RevIN) eps
NEG_INF = -1.0e30
FRACS = (0.5, 0.3, 0.2)      # TMPQ-surrogate seasonal split fractions

# ------------- packed-slab layout (shared between packer and kernel) -------------
BL = B * SEQ_LEN                      # 16  batch-stacked rows
QKV_W = 9 * D_HID                     # 288 [wq|wk|wv] x 3 branches (lane-dense)
WIDE_COLS = QKV_W + 3 * D_HID         # 384 + [wc1] x 3 branches
WIDE_ROWS = 8                         # rows 0..C-1 weights, row C biases, rest pad

MR_WO = 0                             # 3*D rows: out-projection weights (D, C)
MR_WC2 = 3 * D_HID                    # 3*D rows: conv2 weights (D, C)
MR_PROJ = 6 * D_HID                   # (B*P, 4*BL) fused time-projection matrix
MR_PB = MR_PROJ + B * PRED_LEN        # (B*P, 1) summed projection bias column
MR_TM = MR_PB + B * PRED_LEN          # (BL, BL) block-diag trend operator
MR_MEAN = MR_TM + BL                  # (BL, BL) block-diag per-batch mean operator
MR_MASK = MR_MEAN + BL                # (BL, BL) additive cross-batch attention mask
MR_VEC = MR_MASK + BL                 # 18 rows: per-branch [bo, g1, be1, bc2, g2, be2]
MR_AFF = MR_VEC + 18                  # 3 rows: norm_w, norm_b, 1/(norm_w + eps^2)
MISC_ROWS = ((MR_AFF + 3 + 7) // 8) * 8   # 296
MISC_COLS = 128


# ---------------- fused Pallas kernel ----------------
def fused_forward_kernel(x_ref, wide_ref, misc_ref, o_ref):
    """Whole forecast forward in one kernel (batch-stacked, no in-kernel transposes).

    x_ref   : (B, L, C)              input series
    wide_ref: (8, 384)               rows 0..3: [wq'|wk'|wv'] x3 | [wc1] x3, row 4: biases
    misc_ref: (MISC_ROWS, 128)       wo/wc2 blocks, fused projection, trend/mean/mask
                                     operators, per-branch LayerNorm vectors, RevIN affine
    o_ref   : (B, P, C)              forecast output
    """
    f32 = jnp.float32
    Bn, L, C = x_ref.shape
    P = o_ref.shape[1]
    D = D_HID

    def layer_norm(y, g, be):
        mu = jnp.mean(y, axis=-1, keepdims=True)
        va = jnp.mean((y - mu) ** 2, axis=-1, keepdims=True)
        return (y - mu) * lax.rsqrt(va + EPS_LN) * g + be

    x2 = x_ref[...].reshape(BL, C)                                    # (16, 4) batch-stacked

    mean_op = misc_ref[MR_MEAN:MR_MEAN + BL, 0:BL]                    # (16, 16)
    tm_blk = misc_ref[MR_TM:MR_TM + BL, 0:BL]                         # (16, 16)
    mask = misc_ref[MR_MASK:MR_MASK + BL, 0:BL]                       # (16, 16)
    norm_w = misc_ref[MR_AFF:MR_AFF + 1, 0:C]                         # (1, 4)
    norm_b = misc_ref[MR_AFF + 1:MR_AFF + 2, 0:C]
    inv_dw = misc_ref[MR_AFF + 2:MR_AFF + 3, 0:C]                     # 1/(w + eps^2) host-side

    # --- RevIN normalize: per-batch stats via one block-diag mean matmul ---
    mu = jnp.dot(mean_op, x2, preferred_element_type=f32)             # batch mean, row-broadcast
    xc = x2 - mu
    var = jnp.dot(mean_op, xc * xc, preferred_element_type=f32)       # biased var (unbiased=False)
    sd = jnp.sqrt(var + EPS_RN)
    xn = xc * lax.rsqrt(var + EPS_RN) * norm_w + norm_b

    # --- TMPQ surrogate: block-diag moving-average trend + residual split ---
    # TODO(synk): original TMPQ (trend_multi_period_quantized_wavelet) is external /
    # unavailable; deterministic moving-average + frac-weighted seasonal surrogate.
    trend = jnp.dot(tm_blk, xn, preferred_element_type=f32)           # (16, 4)
    resid = xn - trend

    # --- fused QKV for all 3 branches (fracs + 1/sqrt(E) folded into weights) ---
    w_qkv = wide_ref[0:C, 0:QKV_W]                                    # (4, 288)
    b_qkv = wide_ref[C:C + 1, 0:QKV_W]                                # (1, 288)
    qkv = jnp.dot(resid, w_qkv, preferred_element_type=f32) + b_qkv   # (16, 288)

    encs = []
    for br in range(3):                                               # unrolled
        base = 3 * D * br
        q = qkv[:, base:base + D]                                     # (16, 32), pre-scaled
        k = qkv[:, base + D:base + 2 * D]
        v = qkv[:, base + 2 * D:base + 3 * D]
        c = resid * FRACS[br]                                         # seasonal input (residual)

        # attention on both batches at once; cross-batch scores masked to -inf
        s = lax.dot_general(q, k, (((1,), (1,)), ((), ())),
                            preferred_element_type=f32) + mask        # (16, 16)
        s = s - jnp.max(s, axis=-1, keepdims=True)
        e = jnp.exp(s)
        a = e * pl.reciprocal(jnp.sum(e, axis=-1, keepdims=True), approx=True)
        av = jnp.dot(a, v, preferred_element_type=f32)                # (16, 32)

        vrow = MR_VEC + 6 * br
        bo = misc_ref[vrow:vrow + 1, 0:C]
        g1 = misc_ref[vrow + 1:vrow + 2, 0:C]
        be1 = misc_ref[vrow + 2:vrow + 3, 0:C]
        bc2 = misc_ref[vrow + 3:vrow + 4, 0:C]
        g2 = misc_ref[vrow + 4:vrow + 5, 0:C]
        be2 = misc_ref[vrow + 5:vrow + 6, 0:C]

        # out projection + residual + norm1
        wo = misc_ref[MR_WO + br * D:MR_WO + (br + 1) * D, 0:C]       # (32, 4)
        new_x = jnp.dot(av, wo, preferred_element_type=f32) + bo
        y = layer_norm(c + new_x, g1, be1)

        # conv1 (k=1) + relu -> conv2 (k=1) + residual + norm2
        wc1 = wide_ref[0:C, QKV_W + br * D:QKV_W + (br + 1) * D]      # (4, 32)
        bc1 = wide_ref[C:C + 1, QKV_W + br * D:QKV_W + (br + 1) * D]  # (1, 32)
        wc2 = misc_ref[MR_WC2 + br * D:MR_WC2 + (br + 1) * D, 0:C]    # (32, 4)
        h = jnp.maximum(jnp.dot(y, wc1, preferred_element_type=f32) + bc1, 0.0)
        z = jnp.dot(h, wc2, preferred_element_type=f32) + bc2
        encs.append(layer_norm(y + z, g2, be2))                       # (16, 4)

    # --- four time-axis projections + branch sum as ONE matmul ---
    comp = jnp.concatenate([trend] + encs, axis=0)                    # (64, 4)
    w_big = misc_ref[MR_PROJ:MR_PROJ + Bn * P, 0:4 * BL]              # (16, 64) pre-transposed
    pb = misc_ref[MR_PB:MR_PB + Bn * P, 0:1]                          # (16, 1) pre-summed biases
    o = jnp.dot(w_big, comp, preferred_element_type=f32) + pb         # (16, 4)

    # --- RevIN de-normalize (divide replaced by precomputed reciprocal) ---
    o = (o - norm_b) * inv_dw
    o = o * sd + mu            # valid because pred_len == seq_len in this config

    o_ref[...] = o.reshape(Bn, P, C)                                  # single store


# ---------------- host-side wrapper (single pallas_call, no grid) ----------------
def forward_forecast(x_enc, wide, misc):
    Bn, L, C = x_enc.shape
    vmem = pltpu.MemorySpace.VMEM
    return pl.pallas_call(
        fused_forward_kernel,
        out_shape=jax.ShapeDtypeStruct((Bn, PRED_LEN, C), jnp.float32),
        in_specs=[pl.BlockSpec(memory_space=vmem)] * 3,
        out_specs=pl.BlockSpec(memory_space=vmem),
    )(x_enc, wide, misc)


def make_trend_matrix(L):
    """(L, L) operator: edge-padded 3-tap moving average along time."""
    A = np.zeros((L, L), np.float32)
    for i in range(L):
        for j in (i - 1, i, i + 1):
            A[i, min(max(j, 0), L - 1)] += 1.0 / 3.0
    return A


# ---------------- deterministic parameter init ----------------
def init_encoder_params(key, C, D):
    ks = jax.random.split(key, 6)
    s = 0.05
    return {
        "wq": s * jax.random.normal(ks[0], (C, D), jnp.float32),
        "bq": jnp.zeros((D,), jnp.float32),
        "wk": s * jax.random.normal(ks[1], (C, D), jnp.float32),
        "bk": jnp.zeros((D,), jnp.float32),
        "wv": s * jax.random.normal(ks[2], (C, D), jnp.float32),
        "bv": jnp.zeros((D,), jnp.float32),
        "wo": s * jax.random.normal(ks[3], (D, C), jnp.float32),
        "bo": jnp.zeros((C,), jnp.float32),
        "g1": jnp.ones((C,), jnp.float32),
        "be1": jnp.zeros((C,), jnp.float32),
        "wc1": s * jax.random.normal(ks[4], (C, D), jnp.float32),
        "bc1": jnp.zeros((D,), jnp.float32),
        "wc2": s * jax.random.normal(ks[5], (D, C), jnp.float32),
        "bc2": jnp.zeros((C,), jnp.float32),
        "g2": jnp.ones((C,), jnp.float32),
        "be2": jnp.zeros((C,), jnp.float32),
    }


def init_params(key):
    ks = jax.random.split(key, 8)
    s = 0.05
    return {
        "norm_w": jnp.ones((ENC_IN,), jnp.float32),
        "norm_b": jnp.zeros((ENC_IN,), jnp.float32),
        "p1": init_encoder_params(ks[0], ENC_IN, D_HID),
        "p2": init_encoder_params(ks[1], ENC_IN, D_HID),
        "p3": init_encoder_params(ks[2], ENC_IN, D_HID),
        # projection_pN / up_ct: Linear(seq_len -> pred_len), bias init 0 (_init_weights)
        "proj1_w": s * jax.random.normal(ks[3], (SEQ_LEN, PRED_LEN), jnp.float32),
        "proj1_b": jnp.zeros((PRED_LEN,), jnp.float32),
        "proj2_w": s * jax.random.normal(ks[4], (SEQ_LEN, PRED_LEN), jnp.float32),
        "proj2_b": jnp.zeros((PRED_LEN,), jnp.float32),
        "proj3_w": s * jax.random.normal(ks[5], (SEQ_LEN, PRED_LEN), jnp.float32),
        "proj3_b": jnp.zeros((PRED_LEN,), jnp.float32),
        "upct_w": s * jax.random.normal(ks[6], (SEQ_LEN, PRED_LEN), jnp.float32),
        "upct_b": jnp.zeros((PRED_LEN,), jnp.float32),
    }


# ---------------- host-side packing into two lane-dense slabs ----------------
def pack_params(params):
    C, D, L, P = ENC_IN, D_HID, SEQ_LEN, PRED_LEN
    scale = 1.0 / math.sqrt(D)          # FullAttention 1/sqrt(E), E = d_model*enc_in
    ps = [params["p1"], params["p2"], params["p3"]]

    # --- wide slab: fused QKV (+fracs, +scale folded) and conv1 weights/biases ---
    wide = np.zeros((WIDE_ROWS, WIDE_COLS), np.float32)
    for br, (p, fr) in enumerate(zip(ps, FRACS)):
        b0 = 3 * D * br
        wide[0:C, b0 + 0 * D:b0 + 1 * D] = np.asarray(p["wq"]) * (fr * scale)
        wide[0:C, b0 + 1 * D:b0 + 2 * D] = np.asarray(p["wk"]) * fr
        wide[0:C, b0 + 2 * D:b0 + 3 * D] = np.asarray(p["wv"]) * fr
        wide[C, b0 + 0 * D:b0 + 1 * D] = np.asarray(p["bq"]) * scale
        wide[C, b0 + 1 * D:b0 + 2 * D] = np.asarray(p["bk"])
        wide[C, b0 + 2 * D:b0 + 3 * D] = np.asarray(p["bv"])
        c0 = QKV_W + br * D
        wide[0:C, c0:c0 + D] = np.asarray(p["wc1"])
        wide[C, c0:c0 + D] = np.asarray(p["bc1"])

    # --- misc slab ---
    misc = np.zeros((MISC_ROWS, MISC_COLS), np.float32)
    for br, p in enumerate(ps):
        misc[MR_WO + br * D:MR_WO + (br + 1) * D, 0:C] = np.asarray(p["wo"])
        misc[MR_WC2 + br * D:MR_WC2 + (br + 1) * D, 0:C] = np.asarray(p["wc2"])
        vrow = MR_VEC + 6 * br
        for k, name in enumerate(("bo", "g1", "be1", "bc2", "g2", "be2")):
            misc[vrow + k, 0:C] = np.asarray(p[name])

    # fused time-axis projection: components [up_ct, proj1, proj2, proj3], block-diag over batch
    projT = [np.asarray(params["upct_w"]).T,
             np.asarray(params["proj1_w"]).T,
             np.asarray(params["proj2_w"]).T,
             np.asarray(params["proj3_w"]).T]            # each (P, L)
    for comp, wt in enumerate(projT):
        for b in range(B):
            misc[MR_PROJ + b * P:MR_PROJ + (b + 1) * P,
                 comp * BL + b * L:comp * BL + (b + 1) * L] = wt
    pb_sum = (np.asarray(params["upct_b"]) + np.asarray(params["proj1_b"])
              + np.asarray(params["proj2_b"]) + np.asarray(params["proj3_b"]))
    misc[MR_PB:MR_PB + B * P, 0] = np.tile(pb_sum, B)

    tm = make_trend_matrix(L)
    for b in range(B):
        misc[MR_TM + b * L:MR_TM + (b + 1) * L, b * L:(b + 1) * L] = tm
        misc[MR_MEAN + b * L:MR_MEAN + (b + 1) * L, b * L:(b + 1) * L] = 1.0 / L

    mask = np.full((BL, BL), NEG_INF, np.float32)
    for b in range(B):
        mask[b * L:(b + 1) * L, b * L:(b + 1) * L] = 0.0
    misc[MR_MASK:MR_MASK + BL, 0:BL] = mask

    misc[MR_AFF + 0, 0:C] = np.asarray(params["norm_w"])
    misc[MR_AFF + 1, 0:C] = np.asarray(params["norm_b"])
    misc[MR_AFF + 2, 0:C] = 1.0 / (np.asarray(params["norm_w"]) + EPS_RN * EPS_RN)

    return jnp.asarray(wide), jnp.asarray(misc)


if __name__ == "__main__":
    key = jax.random.PRNGKey(0)
    pkey, xkey = jax.random.split(key)
    params = init_params(pkey)
    wide, misc = pack_params(params)        # packed once, host-side, outside jit
    x_enc = jax.random.normal(xkey, (B, SEQ_LEN, ENC_IN), jnp.float32)

    fwd = jax.jit(forward_forecast)
    out = jax.block_until_ready(fwd(x_enc, wide, misc))
    assert out.shape == (B, PRED_LEN, ENC_IN)
    assert bool(jnp.all(jnp.isfinite(out)))
    print("KERNEL_OK")
</pallas_src>

<mosaic_0001>
module attributes {stable_mosaic.version = 11 : i64} {
  func.func @fused_forward_kernel(%arg0: memref<2x8x4xf32, #tpu.memory_space<vmem>>, %arg1: memref<8x384xf32, #tpu.memory_space<vmem>>, %arg2: memref<296x128xf32, #tpu.memory_space<vmem>>, %arg3: memref<2x8x4xf32, #tpu.memory_space<vmem>>) attributes {dimension_semantics = [], scalar_prefetch = 0 : i64, scratch_operands = 0 : i64, tpu.core_type = #tpu.core_type<tc>} {
    %c0 = arith.constant 0 : index
    %c0_0 = arith.constant 0 : index
    %c0_1 = arith.constant 0 : index
    %0 = vector.load %arg0[%c0, %c0_0, %c0_1] : memref<2x8x4xf32, #tpu.memory_space<vmem>>, vector<2x8x4xf32>
    %1 = vector.shape_cast %0 : vector<2x8x4xf32> to vector<16x4xf32>
    %c240 = arith.constant 240 : index
    %c0_2 = arith.constant 0 : index
    %2 = vector.load %arg2[%c240, %c0_2] : memref<296x128xf32, #tpu.memory_space<vmem>>, vector<16x16xf32>
    %c224 = arith.constant 224 : index
    %c0_3 = arith.constant 0 : index
    %3 = vector.load %arg2[%c224, %c0_3] : memref<296x128xf32, #tpu.memory_space<vmem>>, vector<16x16xf32>
    %c256 = arith.constant 256 : index
    %c0_4 = arith.constant 0 : index
    %4 = vector.load %arg2[%c256, %c0_4] : memref<296x128xf32, #tpu.memory_space<vmem>>, vector<16x16xf32>
    %c290 = arith.constant 290 : index
    %c0_5 = arith.constant 0 : index
    %5 = vector.load %arg2[%c290, %c0_5] : memref<296x128xf32, #tpu.memory_space<vmem>>, vector<1x4xf32>
    %c291 = arith.constant 291 : index
    %c0_6 = arith.constant 0 : index
    %6 = vector.load %arg2[%c291, %c0_6] : memref<296x128xf32, #tpu.memory_space<vmem>>, vector<1x4xf32>
    %c292 = arith.constant 292 : index
    %c0_7 = arith.constant 0 : index
    %7 = vector.load %arg2[%c292, %c0_7] : memref<296x128xf32, #tpu.memory_space<vmem>>, vector<1x4xf32>
    %cst = arith.constant dense<0.000000e+00> : vector<16x4xf32>
    %8 = tpu.matmul %2, %1, %cst {dimension_numbers = #tpu.dot_dimension_numbers<[1], [0], [0], [1], [0, 0, 1, 1], [], []>} : vector<16x16xf32>, vector<16x4xf32>, vector<16x4xf32> -> vector<16x4xf32>
    %9 = arith.subf %1, %8 : vector<16x4xf32>
    %10 = arith.mulf %9, %9 : vector<16x4xf32>
    %cst_8 = arith.constant dense<0.000000e+00> : vector<16x4xf32>
    %11 = tpu.matmul %2, %10, %cst_8 {dimension_numbers = #tpu.dot_dimension_numbers<[1], [0], [0], [1], [0, 0, 1, 1], [], []>} : vector<16x16xf32>, vector<16x4xf32>, vector<16x4xf32> -> vector<16x4xf32>
    %cst_9 = arith.constant 9.99999974E-6 : f32
    %12 = vector.broadcast %cst_9 : f32 to vector<16x4xf32>
    %13 = arith.addf %11, %12 : vector<16x4xf32>
    %14 = math.sqrt %13 : vector<16x4xf32>
    %cst_10 = arith.constant 9.99999974E-6 : f32
    %15 = vector.broadcast %cst_10 : f32 to vector<16x4xf32>
    %16 = arith.addf %11, %15 : vector<16x4xf32>
    %17 = math.rsqrt %16 : vector<16x4xf32>
    %18 = arith.mulf %9, %17 : vector<16x4xf32>
    %19 = vector.broadcast %5 : vector<1x4xf32> to vector<16x4xf32>
    %20 = arith.mulf %18, %19 : vector<16x4xf32>
    %21 = vector.broadcast %6 : vector<1x4xf32> to vector<16x4xf32>
    %22 = arith.addf %20, %21 : vector<16x4xf32>
    %cst_11 = arith.constant dense<0.000000e+00> : vector<16x4xf32>
    %23 = tpu.matmul %3, %22, %cst_11 {dimension_numbers = #tpu.dot_dimension_numbers<[1], [0], [0], [1], [0, 0, 1, 1], [], []>} : vector<16x16xf32>, vector<16x4xf32>, vector<16x4xf32> -> vector<16x4xf32>
    %24 = arith.subf %22, %23 : vector<16x4xf32>
    %c0_12 = arith.constant 0 : index
    %c0_13 = arith.constant 0 : index
    %25 = vector.load %arg1[%c0_12, %c0_13] : memref<8x384xf32, #tpu.memory_space<vmem>>, vector<4x288xf32>
    %c4 = arith.constant 4 : index
    %c0_14 = arith.constant 0 : index
    %26 = vector.load %arg1[%c4, %c0_14] : memref<8x384xf32, #tpu.memory_space<vmem>>, vector<1x288xf32>
    %cst_15 = arith.constant dense<0.000000e+00> : vector<16x288xf32>
    %27 = tpu.matmul %24, %25, %cst_15 {dimension_numbers = #tpu.dot_dimension_numbers<[1], [0], [0], [1], [0, 0, 1, 1], [], []>} : vector<16x4xf32>, vector<4x288xf32>, vector<16x288xf32> -> vector<16x288xf32>
    %28 = vector.broadcast %26 : vector<1x288xf32> to vector<16x288xf32>
    %29 = arith.addf %27, %28 : vector<16x288xf32>
    %30 = vector.extract_strided_slice %29 {offsets = [0, 0], sizes = [16, 32], strides = [1, 1]} : vector<16x288xf32> to vector<16x32xf32>
    %31 = vector.extract_strided_slice %29 {offsets = [0, 32], sizes = [16, 32], strides = [1, 1]} : vector<16x288xf32> to vector<16x32xf32>
    %32 = vector.extract_strided_slice %29 {offsets = [0, 64], sizes = [16, 32], strides = [1, 1]} : vector<16x288xf32> to vector<16x32xf32>
    %cst_16 = arith.constant 5.000000e-01 : f32
    %33 = vector.broadcast %cst_16 : f32 to vector<16x4xf32>
    %34 = arith.mulf %24, %33 : vector<16x4xf32>
    %cst_17 = arith.constant dense<0.000000e+00> : vector<16x16xf32>
    %35 = tpu.matmul %30, %31, %cst_17 {dimension_numbers = #tpu.dot_dimension_numbers<[1], [1], [0], [0], [0, 0, 1, 0], [], []>} : vector<16x32xf32>, vector<16x32xf32>, vector<16x16xf32> -> vector<16x16xf32>
    %36 = arith.addf %35, %4 : vector<16x16xf32>
    %cst_18 = arith.constant dense<0xFF800000> : vector<16xf32>
    %37 = vector.multi_reduction <maximumf>, %36, %cst_18 [1] : vector<16x16xf32> to vector<16xf32>
    %38 = vector.shape_cast %37 : vector<16xf32> to vector<16x1xf32>
    %39 = vector.broadcast %38 : vector<16x1xf32> to vector<16x16xf32>
    %40 = arith.subf %36, %39 : vector<16x16xf32>
    %41 = math.exp %40 : vector<16x16xf32>
    %cst_19 = arith.constant dense<0.000000e+00> : vector<16xf32>
    %42 = vector.multi_reduction <add>, %41, %cst_19 [1] : vector<16x16xf32> to vector<16xf32>
    %43 = vector.shape_cast %42 : vector<16xf32> to vector<16x1xf32>
    %44 = tpu.reciprocal %43 {approx = true} : vector<16x1xf32> -> vector<16x1xf32>
    %45 = vector.broadcast %44 : vector<16x1xf32> to vector<16x16xf32>
    %46 = arith.mulf %41, %45 : vector<16x16xf32>
    %cst_20 = arith.constant dense<0.000000e+00> : vector<16x32xf32>
    %47 = tpu.matmul %46, %32, %cst_20 {dimension_numbers = #tpu.dot_dimension_numbers<[1], [0], [0], [1], [0, 0, 1, 1], [], []>} : vector<16x16xf32>, vector<16x32xf32>, vector<16x32xf32> -> vector<16x32xf32>
    %c272 = arith.constant 272 : index
    %c0_21 = arith.constant 0 : index
    %48 = vector.load %arg2[%c272, %c0_21] : memref<296x128xf32, #tpu.memory_space<vmem>>, vector<1x4xf32>
    %c273 = arith.constant 273 : index
    %c0_22 = arith.constant 0 : index
    %49 = vector.load %arg2[%c273, %c0_22] : memref<296x128xf32, #tpu.memory_space<vmem>>, vector<1x4xf32>
    %c274 = arith.constant 274 : index
    %c0_23 = arith.constant 0 : index
    %50 = vector.load %arg2[%c274, %c0_23] : memref<296x128xf32, #tpu.memory_space<vmem>>, vector<1x4xf32>
    %c275 = arith.constant 275 : index
    %c0_24 = arith.constant 0 : index
    %51 = vector.load %arg2[%c275, %c0_24] : memref<296x128xf32, #tpu.memory_space<vmem>>, vector<1x4xf32>
    %c276 = arith.constant 276 : index
    %c0_25 = arith.constant 0 : index
    %52 = vector.load %arg2[%c276, %c0_25] : memref<296x128xf32, #tpu.memory_space<vmem>>, vector<1x4xf32>
    %c277 = arith.constant 277 : index
    %c0_26 = arith.constant 0 : index
    %53 = vector.load %arg2[%c277, %c0_26] : memref<296x128xf32, #tpu.memory_space<vmem>>, vector<1x4xf32>
    %c0_27 = arith.constant 0 : index
    %c0_28 = arith.constant 0 : index
    %54 = vector.load %arg2[%c0_27, %c0_28] : memref<296x128xf32, #tpu.memory_space<vmem>>, vector<32x4xf32>
    %cst_29 = arith.constant dense<0.000000e+00> : vector<16x4xf32>
    %55 = tpu.matmul %47, %54, %cst_29 {dimension_numbers = #tpu.dot_dimension_numbers<[1], [0], [0], [1], [0, 0, 1, 1], [], []>} : vector<16x32xf32>, vector<32x4xf32>, vector<16x4xf32> -> vector<16x4xf32>
    %56 = vector.broadcast %48 : vector<1x4xf32> to vector<16x4xf32>
    %57 = arith.addf %55, %56 : vector<16x4xf32>
    %58 = arith.addf %34, %57 : vector<16x4xf32>
    %cst_30 = arith.constant dense<0.000000e+00> : vector<16xf32>
    %59 = vector.multi_reduction <add>, %58, %cst_30 [1] : vector<16x4xf32> to vector<16xf32>
    %60 = vector.shape_cast %59 : vector<16xf32> to vector<16x1xf32>
    %cst_31 = arith.constant 4.000000e+00 : f32
    %61 = vector.broadcast %cst_31 : f32 to vector<16x1xf32>
    %62 = arith.divf %60, %61 : vector<16x1xf32>
    %63 = vector.broadcast %62 : vector<16x1xf32> to vector<16x4xf32>
    %64 = arith.subf %58, %63 : vector<16x4xf32>
    %65 = arith.mulf %64, %64 : vector<16x4xf32>
    %cst_32 = arith.constant dense<0.000000e+00> : vector<16xf32>
    %66 = vector.multi_reduction <add>, %65, %cst_32 [1] : vector<16x4xf32> to vector<16xf32>
    %67 = vector.shape_cast %66 : vector<16xf32> to vector<16x1xf32>
    %cst_33 = arith.constant 4.000000e+00 : f32
    %68 = vector.broadcast %cst_33 : f32 to vector<16x1xf32>
    %69 = arith.divf %67, %68 : vector<16x1xf32>
    %70 = vector.broadcast %62 : vector<16x1xf32> to vector<16x4xf32>
    %71 = arith.subf %58, %70 : vector<16x4xf32>
    %cst_34 = arith.constant 9.99999974E-6 : f32
    %72 = vector.broadcast %cst_34 : f32 to vector<16x1xf32>
    %73 = arith.addf %69, %72 : vector<16x1xf32>
    %74 = math.rsqrt %73 : vector<16x1xf32>
    %75 = vector.broadcast %74 : vector<16x1xf32> to vector<16x4xf32>
    %76 = arith.mulf %71, %75 : vector<16x4xf32>
    %77 = vector.broadcast %49 : vector<1x4xf32> to vector<16x4xf32>
    %78 = arith.mulf %76, %77 : vector<16x4xf32>
    %79 = vector.broadcast %50 : vector<1x4xf32> to vector<16x4xf32>
    %80 = arith.addf %78, %79 : vector<16x4xf32>
    %c0_35 = arith.constant 0 : index
    %c288 = arith.constant 288 : index
    %81 = vector.load %arg1[%c0_35, %c288] : memref<8x384xf32, #tpu.memory_space<vmem>>, vector<4x32xf32>
    %c4_36 = arith.constant 4 : index
    %c288_37 = arith.constant 288 : index
    %82 = vector.load %arg1[%c4_36, %c288_37] : memref<8x384xf32, #tpu.memory_space<vmem>>, vector<1x32xf32>
    %c96 = arith.constant 96 : index
    %c0_38 = arith.constant 0 : index
    %83 = vector.load %arg2[%c96, %c0_38] : memref<296x128xf32, #tpu.memory_space<vmem>>, vector<32x4xf32>
    %cst_39 = arith.constant dense<0.000000e+00> : vector<16x32xf32>
    %84 = tpu.matmul %80, %81, %cst_39 {dimension_numbers = #tpu.dot_dimension_numbers<[1], [0], [0], [1], [0, 0, 1, 1], [], []>} : vector<16x4xf32>, vector<4x32xf32>, vector<16x32xf32> -> vector<16x32xf32>
    %85 = vector.broadcast %82 : vector<1x32xf32> to vector<16x32xf32>
    %86 = arith.addf %84, %85 : vector<16x32xf32>
    %cst_40 = arith.constant 0.000000e+00 : f32
    %87 = vector.broadcast %cst_40 : f32 to vector<16x32xf32>
    %88 = arith.maximumf %86, %87 : vector<16x32xf32>
    %cst_41 = arith.constant dense<0.000000e+00> : vector<16x4xf32>
    %89 = tpu.matmul %88, %83, %cst_41 {dimension_numbers = #tpu.dot_dimension_numbers<[1], [0], [0], [1], [0, 0, 1, 1], [], []>} : vector<16x32xf32>, vector<32x4xf32>, vector<16x4xf32> -> vector<16x4xf32>
    %90 = vector.broadcast %51 : vector<1x4xf32> to vector<16x4xf32>
    %91 = arith.addf %89, %90 : vector<16x4xf32>
    %92 = arith.addf %80, %91 : vector<16x4xf32>
    %cst_42 = arith.constant dense<0.000000e+00> : vector<16xf32>
    %93 = vector.multi_reduction <add>, %92, %cst_42 [1] : vector<16x4xf32> to vector<16xf32>
    %94 = vector.shape_cast %93 : vector<16xf32> to vector<16x1xf32>
    %cst_43 = arith.constant 4.000000e+00 : f32
    %95 = vector.broadcast %cst_43 : f32 to vector<16x1xf32>
    %96 = arith.divf %94, %95 : vector<16x1xf32>
    %97 = vector.broadcast %96 : vector<16x1xf32> to vector<16x4xf32>
    %98 = arith.subf %92, %97 : vector<16x4xf32>
    %99 = arith.mulf %98, %98 : vector<16x4xf32>
    %cst_44 = arith.constant dense<0.000000e+00> : vector<16xf32>
    %100 = vector.multi_reduction <add>, %99, %cst_44 [1] : vector<16x4xf32> to vector<16xf32>
    %101 = vector.shape_cast %100 : vector<16xf32> to vector<16x1xf32>
    %cst_45 = arith.constant 4.000000e+00 : f32
    %102 = vector.broadcast %cst_45 : f32 to vector<16x1xf32>
    %103 = arith.divf %101, %102 : vector<16x1xf32>
    %104 = vector.broadcast %96 : vector<16x1xf32> to vector<16x4xf32>
    %105 = arith.subf %92, %104 : vector<16x4xf32>
    %cst_46 = arith.constant 9.99999974E-6 : f32
    %106 = vector.broadcast %cst_46 : f32 to vector<16x1xf32>
    %107 = arith.addf %103, %106 : vector<16x1xf32>
    %108 = math.rsqrt %107 : vector<16x1xf32>
    %109 = vector.broadcast %108 : vector<16x1xf32> to vector<16x4xf32>
    %110 = arith.mulf %105, %109 : vector<16x4xf32>
    %111 = vector.broadcast %52 : vector<1x4xf32> to vector<16x4xf32>
    %112 = arith.mulf %110, %111 : vector<16x4xf32>
    %113 = vector.broadcast %53 : vector<1x4xf32> to vector<16x4xf32>
    %114 = arith.addf %112, %113 : vector<16x4xf32>
    %115 = vector.extract_strided_slice %29 {offsets = [0, 96], sizes = [16, 32], strides = [1, 1]} : vector<16x288xf32> to vector<16x32xf32>
    %116 = vector.extract_strided_slice %29 {offsets = [0, 128], sizes = [16, 32], strides = [1, 1]} : vector<16x288xf32> to vector<16x32xf32>
    %117 = vector.extract_strided_slice %29 {offsets = [0, 160], sizes = [16, 32], strides = [1, 1]} : vector<16x288xf32> to vector<16x32xf32>
    %cst_47 = arith.constant 3.000000e-01 : f32
    %118 = vector.broadcast %cst_47 : f32 to vector<16x4xf32>
    %119 = arith.mulf %24, %118 : vector<16x4xf32>
    %cst_48 = arith.constant dense<0.000000e+00> : vector<16x16xf32>
    %120 = tpu.matmul %115, %116, %cst_48 {dimension_numbers = #tpu.dot_dimension_numbers<[1], [1], [0], [0], [0, 0, 1, 0], [], []>} : vector<16x32xf32>, vector<16x32xf32>, vector<16x16xf32> -> vector<16x16xf32>
    %121 = arith.addf %120, %4 : vector<16x16xf32>
    %cst_49 = arith.constant dense<0xFF800000> : vector<16xf32>
    %122 = vector.multi_reduction <maximumf>, %121, %cst_49 [1] : vector<16x16xf32> to vector<16xf32>
    %123 = vector.shape_cast %122 : vector<16xf32> to vector<16x1xf32>
    %124 = vector.broadcast %123 : vector<16x1xf32> to vector<16x16xf32>
    %125 = arith.subf %121, %124 : vector<16x16xf32>
    %126 = math.exp %125 : vector<16x16xf32>
    %cst_50 = arith.constant dense<0.000000e+00> : vector<16xf32>
    %127 = vector.multi_reduction <add>, %126, %cst_50 [1] : vector<16x16xf32> to vector<16xf32>
    %128 = vector.shape_cast %127 : vector<16xf32> to vector<16x1xf32>
    %129 = tpu.reciprocal %128 {approx = true} : vector<16x1xf32> -> vector<16x1xf32>
    %130 = vector.broadcast %129 : vector<16x1xf32> to vector<16x16xf32>
    %131 = arith.mulf %126, %130 : vector<16x16xf32>
    %cst_51 = arith.constant dense<0.000000e+00> : vector<16x32xf32>
    %132 = tpu.matmul %131, %117, %cst_51 {dimension_numbers = #tpu.dot_dimension_numbers<[1], [0], [0], [1], [0, 0, 1, 1], [], []>} : vector<16x16xf32>, vector<16x32xf32>, vector<16x32xf32> -> vector<16x32xf32>
    %c278 = arith.constant 278 : index
    %c0_52 = arith.constant 0 : index
    %133 = vector.load %arg2[%c278, %c0_52] : memref<296x128xf32, #tpu.memory_space<vmem>>, vector<1x4xf32>
    %c279 = arith.constant 279 : index
    %c0_53 = arith.constant 0 : index
    %134 = vector.load %arg2[%c279, %c0_53] : memref<296x128xf32, #tpu.memory_space<vmem>>, vector<1x4xf32>
    %c280 = arith.constant 280 : index
    %c0_54 = arith.constant 0 : index
    %135 = vector.load %arg2[%c280, %c0_54] : memref<296x128xf32, #tpu.memory_space<vmem>>, vector<1x4xf32>
    %c281 = arith.constant 281 : index
    %c0_55 = arith.constant 0 : index
    %136 = vector.load %arg2[%c281, %c0_55] : memref<296x128xf32, #tpu.memory_space<vmem>>, vector<1x4xf32>
    %c282 = arith.constant 282 : index
    %c0_56 = arith.constant 0 : index
    %137 = vector.load %arg2[%c282, %c0_56] : memref<296x128xf32, #tpu.memory_space<vmem>>, vector<1x4xf32>
    %c283 = arith.constant 283 : index
    %c0_57 = arith.constant 0 : index
    %138 = vector.load %arg2[%c283, %c0_57] : memref<296x128xf32, #tpu.memory_space<vmem>>, vector<1x4xf32>
    %c32 = arith.constant 32 : index
    %c0_58 = arith.constant 0 : index
    %139 = vector.load %arg2[%c32, %c0_58] : memref<296x128xf32, #tpu.memory_space<vmem>>, vector<32x4xf32>
    %cst_59 = arith.constant dense<0.000000e+00> : vector<16x4xf32>
    %140 = tpu.matmul %132, %139, %cst_59 {dimension_numbers = #tpu.dot_dimension_numbers<[1], [0], [0], [1], [0, 0, 1, 1], [], []>} : vector<16x32xf32>, vector<32x4xf32>, vector<16x4xf32> -> vector<16x4xf32>
    %141 = vector.broadcast %133 : vector<1x4xf32> to vector<16x4xf32>
    %142 = arith.addf %140, %141 : vector<16x4xf32>
    %143 = arith.addf %119, %142 : vector<16x4xf32>
    %cst_60 = arith.constant dense<0.000000e+00> : vector<16xf32>
    %144 = vector.multi_reduction <add>, %143, %cst_60 [1] : vector<16x4xf32> to vector<16xf32>
    %145 = vector.shape_cast %144 : vector<16xf32> to vector<16x1xf32>
    %cst_61 = arith.constant 4.000000e+00 : f32
    %146 = vector.broadcast %cst_61 : f32 to vector<16x1xf32>
    %147 = arith.divf %145, %146 : vector<16x1xf32>
    %148 = vector.broadcast %147 : vector<16x1xf32> to vector<16x4xf32>
    %149 = arith.subf %143, %148 : vector<16x4xf32>
    %150 = arith.mulf %149, %149 : vector<16x4xf32>
    %cst_62 = arith.constant dense<0.000000e+00> : vector<16xf32>
    %151 = vector.multi_reduction <add>, %150, %cst_62 [1] : vector<16x4xf32> to vector<16xf32>
    %152 = vector.shape_cast %151 : vector<16xf32> to vector<16x1xf32>
    %cst_63 = arith.constant 4.000000e+00 : f32
    %153 = vector.broadcast %cst_63 : f32 to vector<16x1xf32>
    %154 = arith.divf %152, %153 : vector<16x1xf32>
    %155 = vector.broadcast %147 : vector<16x1xf32> to vector<16x4xf32>
    %156 = arith.subf %143, %155 : vector<16x4xf32>
    %cst_64 = arith.constant 9.99999974E-6 : f32
    %157 = vector.broadcast %cst_64 : f32 to vector<16x1xf32>
    %158 = arith.addf %154, %157 : vector<16x1xf32>
    %159 = math.rsqrt %158 : vector<16x1xf32>
    %160 = vector.broadcast %159 : vector<16x1xf32> to vector<16x4xf32>
    %161 = arith.mulf %156, %160 : vector<16x4xf32>
    %162 = vector.broadcast %134 : vector<1x4xf32> to vector<16x4xf32>
    %163 = arith.mulf %161, %162 : vector<16x4xf32>
    %164 = vector.broadcast %135 : vector<1x4xf32> to vector<16x4xf32>
    %165 = arith.addf %163, %164 : vector<16x4xf32>
    %c0_65 = arith.constant 0 : index
    %c320 = arith.constant 320 : index
    %166 = vector.load %arg1[%c0_65, %c320] : memref<8x384xf32, #tpu.memory_space<vmem>>, vector<4x32xf32>
    %c4_66 = arith.constant 4 : index
    %c320_67 = arith.constant 320 : index
    %167 = vector.load %arg1[%c4_66, %c320_67] : memref<8x384xf32, #tpu.memory_space<vmem>>, vector<1x32xf32>
    %c128 = arith.constant 128 : index
    %c0_68 = arith.constant 0 : index
    %168 = vector.load %arg2[%c128, %c0_68] : memref<296x128xf32, #tpu.memory_space<vmem>>, vector<32x4xf32>
    %cst_69 = arith.constant dense<0.000000e+00> : vector<16x32xf32>
    %169 = tpu.matmul %165, %166, %cst_69 {dimension_numbers = #tpu.dot_dimension_numbers<[1], [0], [0], [1], [0, 0, 1, 1], [], []>} : vector<16x4xf32>, vector<4x32xf32>, vector<16x32xf32> -> vector<16x32xf32>
    %170 = vector.broadcast %167 : vector<1x32xf32> to vector<16x32xf32>
    %171 = arith.addf %169, %170 : vector<16x32xf32>
    %cst_70 = arith.constant 0.000000e+00 : f32
    %172 = vector.broadcast %cst_70 : f32 to vector<16x32xf32>
    %173 = arith.maximumf %171, %172 : vector<16x32xf32>
    %cst_71 = arith.constant dense<0.000000e+00> : vector<16x4xf32>
    %174 = tpu.matmul %173, %168, %cst_71 {dimension_numbers = #tpu.dot_dimension_numbers<[1], [0], [0], [1], [0, 0, 1, 1], [], []>} : vector<16x32xf32>, vector<32x4xf32>, vector<16x4xf32> -> vector<16x4xf32>
    %175 = vector.broadcast %136 : vector<1x4xf32> to vector<16x4xf32>
    %176 = arith.addf %174, %175 : vector<16x4xf32>
    %177 = arith.addf %165, %176 : vector<16x4xf32>
    %cst_72 = arith.constant dense<0.000000e+00> : vector<16xf32>
    %178 = vector.multi_reduction <add>, %177, %cst_72 [1] : vector<16x4xf32> to vector<16xf32>
    %179 = vector.shape_cast %178 : vector<16xf32> to vector<16x1xf32>
    %cst_73 = arith.constant 4.000000e+00 : f32
    %180 = vector.broadcast %cst_73 : f32 to vector<16x1xf32>
    %181 = arith.divf %179, %180 : vector<16x1xf32>
    %182 = vector.broadcast %181 : vector<16x1xf32> to vector<16x4xf32>
    %183 = arith.subf %177, %182 : vector<16x4xf32>
    %184 = arith.mulf %183, %183 : vector<16x4xf32>
    %cst_74 = arith.constant dense<0.000000e+00> : vector<16xf32>
    %185 = vector.multi_reduction <add>, %184, %cst_74 [1] : vector<16x4xf32> to vector<16xf32>
    %186 = vector.shape_cast %185 : vector<16xf32> to vector<16x1xf32>
    %cst_75 = arith.constant 4.000000e+00 : f32
    %187 = vector.broadcast %cst_75 : f32 to vector<16x1xf32>
    %188 = arith.divf %186, %187 : vector<16x1xf32>
    %189 = vector.broadcast %181 : vector<16x1xf32> to vector<16x4xf32>
    %190 = arith.subf %177, %189 : vector<16x4xf32>
    %cst_76 = arith.constant 9.99999974E-6 : f32
    %191 = vector.broadcast %cst_76 : f32 to vector<16x1xf32>
    %192 = arith.addf %188, %191 : vector<16x1xf32>
    %193 = math.rsqrt %192 : vector<16x1xf32>
    %194 = vector.broadcast %193 : vector<16x1xf32> to vector<16x4xf32>
    %195 = arith.mulf %190, %194 : vector<16x4xf32>
    %196 = vector.broadcast %137 : vector<1x4xf32> to vector<16x4xf32>
    %197 = arith.mulf %195, %196 : vector<16x4xf32>
    %198 = vector.broadcast %138 : vector<1x4xf32> to vector<16x4xf32>
    %199 = arith.addf %197, %198 : vector<16x4xf32>
    %200 = vector.extract_strided_slice %29 {offsets = [0, 192], sizes = [16, 32], strides = [1, 1]} : vector<16x288xf32> to vector<16x32xf32>
    %201 = vector.extract_strided_slice %29 {offsets = [0, 224], sizes = [16, 32], strides = [1, 1]} : vector<16x288xf32> to vector<16x32xf32>
    %202 = vector.extract_strided_slice %29 {offsets = [0, 256], sizes = [16, 32], strides = [1, 1]} : vector<16x288xf32> to vector<16x32xf32>
    %cst_77 = arith.constant 2.000000e-01 : f32
    %203 = vector.broadcast %cst_77 : f32 to vector<16x4xf32>
    %204 = arith.mulf %24, %203 : vector<16x4xf32>
    %cst_78 = arith.constant dense<0.000000e+00> : vector<16x16xf32>
    %205 = tpu.matmul %200, %201, %cst_78 {dimension_numbers = #tpu.dot_dimension_numbers<[1], [1], [0], [0], [0, 0, 1, 0], [], []>} : vector<16x32xf32>, vector<16x32xf32>, vector<16x16xf32> -> vector<16x16xf32>
    %206 = arith.addf %205, %4 : vector<16x16xf32>
    %cst_79 = arith.constant dense<0xFF800000> : vector<16xf32>
    %207 = vector.multi_reduction <maximumf>, %206, %cst_79 [1] : vector<16x16xf32> to vector<16xf32>
    %208 = vector.shape_cast %207 : vector<16xf32> to vector<16x1xf32>
    %209 = vector.broadcast %208 : vector<16x1xf32> to vector<16x16xf32>
    %210 = arith.subf %206, %209 : vector<16x16xf32>
    %211 = math.exp %210 : vector<16x16xf32>
    %cst_80 = arith.constant dense<0.000000e+00> : vector<16xf32>
    %212 = vector.multi_reduction <add>, %211, %cst_80 [1] : vector<16x16xf32> to vector<16xf32>
    %213 = vector.shape_cast %212 : vector<16xf32> to vector<16x1xf32>
    %214 = tpu.reciprocal %213 {approx = true} : vector<16x1xf32> -> vector<16x1xf32>
    %215 = vector.broadcast %214 : vector<16x1xf32> to vector<16x16xf32>
    %216 = arith.mulf %211, %215 : vector<16x16xf32>
    %cst_81 = arith.constant dense<0.000000e+00> : vector<16x32xf32>
    %217 = tpu.matmul %216, %202, %cst_81 {dimension_numbers = #tpu.dot_dimension_numbers<[1], [0], [0], [1], [0, 0, 1, 1], [], []>} : vector<16x16xf32>, vector<16x32xf32>, vector<16x32xf32> -> vector<16x32xf32>
    %c284 = arith.constant 284 : index
    %c0_82 = arith.constant 0 : index
    %218 = vector.load %arg2[%c284, %c0_82] : memref<296x128xf32, #tpu.memory_space<vmem>>, vector<1x4xf32>
    %c285 = arith.constant 285 : index
    %c0_83 = arith.constant 0 : index
    %219 = vector.load %arg2[%c285, %c0_83] : memref<296x128xf32, #tpu.memory_space<vmem>>, vector<1x4xf32>
    %c286 = arith.constant 286 : index
    %c0_84 = arith.constant 0 : index
    %220 = vector.load %arg2[%c286, %c0_84] : memref<296x128xf32, #tpu.memory_space<vmem>>, vector<1x4xf32>
    %c287 = arith.constant 287 : index
    %c0_85 = arith.constant 0 : index
    %221 = vector.load %arg2[%c287, %c0_85] : memref<296x128xf32, #tpu.memory_space<vmem>>, vector<1x4xf32>
    %c288_86 = arith.constant 288 : index
    %c0_87 = arith.constant 0 : index
    %222 = vector.load %arg2[%c288_86, %c0_87] : memref<296x128xf32, #tpu.memory_space<vmem>>, vector<1x4xf32>
    %c289 = arith.constant 289 : index
    %c0_88 = arith.constant 0 : index
    %223 = vector.load %arg2[%c289, %c0_88] : memref<296x128xf32, #tpu.memory_space<vmem>>, vector<1x4xf32>
    %c64 = arith.constant 64 : index
    %c0_89 = arith.constant 0 : index
    %224 = vector.load %arg2[%c64, %c0_89] : memref<296x128xf32, #tpu.memory_space<vmem>>, vector<32x4xf32>
    %cst_90 = arith.constant dense<0.000000e+00> : vector<16x4xf32>
    %225 = tpu.matmul %217, %224, %cst_90 {dimension_numbers = #tpu.dot_dimension_numbers<[1], [0], [0], [1], [0, 0, 1, 1], [], []>} : vector<16x32xf32>, vector<32x4xf32>, vector<16x4xf32> -> vector<16x4xf32>
    %226 = vector.broadcast %218 : vector<1x4xf32> to vector<16x4xf32>
    %227 = arith.addf %225, %226 : vector<16x4xf32>
    %228 = arith.addf %204, %227 : vector<16x4xf32>
    %cst_91 = arith.constant dense<0.000000e+00> : vector<16xf32>
    %229 = vector.multi_reduction <add>, %228, %cst_91 [1] : vector<16x4xf32> to vector<16xf32>
    %230 = vector.shape_cast %229 : vector<16xf32> to vector<16x1xf32>
    %cst_92 = arith.constant 4.000000e+00 : f32
    %231 = vector.broadcast %cst_92 : f32 to vector<16x1xf32>
    %232 = arith.divf %230, %231 : vector<16x1xf32>
    %233 = vector.broadcast %232 : vector<16x1xf32> to vector<16x4xf32>
    %234 = arith.subf %228, %233 : vector<16x4xf32>
    %235 = arith.mulf %234, %234 : vector<16x4xf32>
    %cst_93 = arith.constant dense<0.000000e+00> : vector<16xf32>
    %236 = vector.multi_reduction <add>, %235, %cst_93 [1] : vector<16x4xf32> to vector<16xf32>
    %237 = vector.shape_cast %236 : vector<16xf32> to vector<16x1xf32>
    %cst_94 = arith.constant 4.000000e+00 : f32
    %238 = vector.broadcast %cst_94 : f32 to vector<16x1xf32>
    %239 = arith.divf %237, %238 : vector<16x1xf32>
    %240 = vector.broadcast %232 : vector<16x1xf32> to vector<16x4xf32>
    %241 = arith.subf %228, %240 : vector<16x4xf32>
    %cst_95 = arith.constant 9.99999974E-6 : f32
    %242 = vector.broadcast %cst_95 : f32 to vector<16x1xf32>
    %243 = arith.addf %239, %242 : vector<16x1xf32>
    %244 = math.rsqrt %243 : vector<16x1xf32>
    %245 = vector.broadcast %244 : vector<16x1xf32> to vector<16x4xf32>
    %246 = arith.mulf %241, %245 : vector<16x4xf32>
    %247 = vector.broadcast %219 : vector<1x4xf32> to vector<16x4xf32>
    %248 = arith.mulf %246, %247 : vector<16x4xf32>
    %249 = vector.broadcast %220 : vector<1x4xf32> to vector<16x4xf32>
    %250 = arith.addf %248, %249 : vector<16x4xf32>
    %c0_96 = arith.constant 0 : index
    %c352 = arith.constant 352 : index
    %251 = vector.load %arg1[%c0_96, %c352] : memref<8x384xf32, #tpu.memory_space<vmem>>, vector<4x32xf32>
    %c4_97 = arith.constant 4 : index
    %c352_98 = arith.constant 352 : index
    %252 = vector.load %arg1[%c4_97, %c352_98] : memref<8x384xf32, #tpu.memory_space<vmem>>, vector<1x32xf32>
    %c160 = arith.constant 160 : index
    %c0_99 = arith.constant 0 : index
    %253 = vector.load %arg2[%c160, %c0_99] : memref<296x128xf32, #tpu.memory_space<vmem>>, vector<32x4xf32>
    %cst_100 = arith.constant dense<0.000000e+00> : vector<16x32xf32>
    %254 = tpu.matmul %250, %251, %cst_100 {dimension_numbers = #tpu.dot_dimension_numbers<[1], [0], [0], [1], [0, 0, 1, 1], [], []>} : vector<16x4xf32>, vector<4x32xf32>, vector<16x32xf32> -> vector<16x32xf32>
    %255 = vector.broadcast %252 : vector<1x32xf32> to vector<16x32xf32>
    %256 = arith.addf %254, %255 : vector<16x32xf32>
    %cst_101 = arith.constant 0.000000e+00 : f32
    %257 = vector.broadcast %cst_101 : f32 to vector<16x32xf32>
    %258 = arith.maximumf %256, %257 : vector<16x32xf32>
    %cst_102 = arith.constant dense<0.000000e+00> : vector<16x4xf32>
    %259 = tpu.matmul %258, %253, %cst_102 {dimension_numbers = #tpu.dot_dimension_numbers<[1], [0], [0], [1], [0, 0, 1, 1], [], []>} : vector<16x32xf32>, vector<32x4xf32>, vector<16x4xf32> -> vector<16x4xf32>
    %260 = vector.broadcast %221 : vector<1x4xf32> to vector<16x4xf32>
    %261 = arith.addf %259, %260 : vector<16x4xf32>
    %262 = arith.addf %250, %261 : vector<16x4xf32>
    %cst_103 = arith.constant dense<0.000000e+00> : vector<16xf32>
    %263 = vector.multi_reduction <add>, %262, %cst_103 [1] : vector<16x4xf32> to vector<16xf32>
    %264 = vector.shape_cast %263 : vector<16xf32> to vector<16x1xf32>
    %cst_104 = arith.constant 4.000000e+00 : f32
    %265 = vector.broadcast %cst_104 : f32 to vector<16x1xf32>
    %266 = arith.divf %264, %265 : vector<16x1xf32>
    %267 = vector.broadcast %266 : vector<16x1xf32> to vector<16x4xf32>
    %268 = arith.subf %262, %267 : vector<16x4xf32>
    %269 = arith.mulf %268, %268 : vector<16x4xf32>
    %cst_105 = arith.constant dense<0.000000e+00> : vector<16xf32>
    %270 = vector.multi_reduction <add>, %269, %cst_105 [1] : vector<16x4xf32> to vector<16xf32>
    %271 = vector.shape_cast %270 : vector<16xf32> to vector<16x1xf32>
    %cst_106 = arith.constant 4.000000e+00 : f32
    %272 = vector.broadcast %cst_106 : f32 to vector<16x1xf32>
    %273 = arith.divf %271, %272 : vector<16x1xf32>
    %274 = vector.broadcast %266 : vector<16x1xf32> to vector<16x4xf32>
    %275 = arith.subf %262, %274 : vector<16x4xf32>
    %cst_107 = arith.constant 9.99999974E-6 : f32
    %276 = vector.broadcast %cst_107 : f32 to vector<16x1xf32>
    %277 = arith.addf %273, %276 : vector<16x1xf32>
    %278 = math.rsqrt %277 : vector<16x1xf32>
    %279 = vector.broadcast %278 : vector<16x1xf32> to vector<16x4xf32>
    %280 = arith.mulf %275, %279 : vector<16x4xf32>
    %281 = vector.broadcast %222 : vector<1x4xf32> to vector<16x4xf32>
    %282 = arith.mulf %280, %281 : vector<16x4xf32>
    %283 = vector.broadcast %223 : vector<1x4xf32> to vector<16x4xf32>
    %284 = arith.addf %282, %283 : vector<16x4xf32>
    %285 = tpu.concatenate %23, %114, %199, %284 in 0 : vector<16x4xf32>, vector<16x4xf32>, vector<16x4xf32>, vector<16x4xf32> -> vector<64x4xf32>
    %c192 = arith.constant 192 : index
    %c0_108 = arith.constant 0 : index
    %286 = vector.load %arg2[%c192, %c0_108] : memref<296x128xf32, #tpu.memory_space<vmem>>, vector<16x64xf32>
    %c208 = arith.constant 208 : index
    %c0_109 = arith.constant 0 : index
    %287 = vector.load %arg2[%c208, %c0_109] : memref<296x128xf32, #tpu.memory_space<vmem>>, vector<16x1xf32>
    %cst_110 = arith.constant dense<0.000000e+00> : vector<16x4xf32>
    %288 = tpu.matmul %286, %285, %cst_110 {dimension_numbers = #tpu.dot_dimension_numbers<[1], [0], [0], [1], [0, 0, 1, 1], [], []>} : vector<16x64xf32>, vector<64x4xf32>, vector<16x4xf32> -> vector<16x4xf32>
    %289 = vector.broadcast %287 : vector<16x1xf32> to vector<16x4xf32>
    %290 = arith.addf %288, %289 : vector<16x4xf32>
    %291 = vector.broadcast %6 : vector<1x4xf32> to vector<16x4xf32>
    %292 = arith.subf %290, %291 : vector<16x4xf32>
    %293 = vector.broadcast %7 : vector<1x4xf32> to vector<16x4xf32>
    %294 = arith.mulf %292, %293 : vector<16x4xf32>
    %295 = arith.mulf %294, %14 : vector<16x4xf32>
    %296 = arith.addf %295, %8 : vector<16x4xf32>
    %297 = vector.shape_cast %296 : vector<16x4xf32> to vector<2x8x4xf32>
    %c0_111 = arith.constant 0 : index
    %c0_112 = arith.constant 0 : index
    %c0_113 = arith.constant 0 : index
    %298 = vector.load %arg3[%c0_111, %c0_112, %c0_113] : memref<2x8x4xf32, #tpu.memory_space<vmem>>, vector<2x8x4xf32>
    tpu.vector_store %arg3[%c0_111, %c0_112, %c0_113], %297 {strides = array<i32>} : memref<2x8x4xf32, #tpu.memory_space<vmem>>, vector<2x8x4xf32>,
    return
  }
}

</mosaic_0001>

<bundles_post_ra>
// kernel: forward_forecast.1
= control target key start
LH: loop header
LB: loop body
LE: loop exit
PB: predicated region body
PF: predicated region fallthrough
CT: control target
= control target key end

     0   :  { %8 = vsyncpa [#allocation3], 0  ;;  %s1463_s15 = smov [#allocation2]   ;;  %s1464_s17 = smov 128   ;;  %s1827_s0 = inlined_call_operand.vmem [shape: f32[2,8,4], index: 0, kind: input, shape index: {}]   ;;  %s1828_s1 = inlined_call_operand.vmem [shape: f32[8,384], index: 1, kind: input, shape index: {}]   ;;  %s1829_s2 = inlined_call_operand.hbm [shape: f32[296,128], index: 2, kind: input, shape index: {}]   ;;  %s1830_s3 = inlined_call_operand.vmem [shape: f32[2,8,4], index: 3, kind: output, shape index: {}]  }
   0x1   :  { %s17_s14 = sshll.u32 %s1829_s2, 4  ;;  %s19_s16 = sshll.u32 %s1463_s15, 4  ;;  %s18_s14 = int_to_ptr.hbm [resolvable:$true] %s17_s14  ;;  %s20_s16 = int_to_ptr.vmem [resolvable:$true] %s19_s16 }
   0x2   :  { %s1465_s18 = smov 8  }
   0x3   :  { %25 = dma.hbm_to_vmem [thread:$0]  %s18_s14, 4736, %s20_s16, [#allocation3], %s1464_s17, %s1464_s17, %s1465_s18  }
   0x4   :  { %1461 = dma.done.wait [#allocation3], 4736  }
   0x5   :  { %1462 = vsyncadd [#allocation3], 4294962560  ;;  %v31_v0 = vld [vmem:[%s1827_s0 + $0x8] sm:$0xff]  ;;  %v30_v1 = vld [vmem:[%s1827_s0] sm:$0xff]  ;;  %vm41_vm0 = vcmask 130048   ;;  %vm200_vm11 = vcmask 1043456  }
   0x6   :  { %v33_v2 = vld [vmem:[#allocation2 + $0xf8] sm:$0xff]  ;;  %1338 = vmatpush.msra.mxu1 %v31_v0  ;;  %62 = vmatpush.msra.mxu0 %v31_v0  ;;  %v32_v3 = vld [vmem:[#allocation2 + $0xf0] sm:$0xff]  ;;  %v1361_v31 = vld [vmem:[#allocation2 + $0x122] ss:$0 sm:$0xff]  ;;  %vm193_vm12 = vcmask 31744   ;;  %s1466_s29 = smov 96  }
   0x7   :  { %v1362_v39 = vld [vmem:[#allocation2 + $0x123] ss:$0 sm:$0xff]  ;;  %v35_v45 = vld [vmem:[#allocation2 + $0xe8] sm:$0xff]  ;;  %v1522_v47 = vld [vmem:[%s1828_s1 + $0x10] sm:$0xf]  ;;  %vm287_vm13 = vcmask 261120  }
   0x8   :  { %1339 = vmatpush.msra.mxu1 %v30_v1  ;;  %63 = vmatpush.msra.mxu0 %v30_v1  ;;  %v34_v44 = vld [vmem:[#allocation2 + $0xe0] sm:$0xff]  ;;  %v182_v48 = vld [vmem:[%s1828_s1 + $0x8] sm:$0xf]  ;;  %s1467_s30 = smov 32   ;;  %s1468_s4 = smov 64  }
   0x9   :  { %1282 = vmatmul.msk.f32.vlgmr.msra.gmra.mxu1 %vm41_vm0, %v33_v2  ;;  %1281 = vmatmul.msk.f32.vlgmr.msra.gmra.mxu0 %vm41_vm0, %v32_v3  ;;  %v181_v46 = vld [vmem:[%s1828_s1] sm:$0xf]  ;;  %v1557_v53 = vld [vmem:[%s1828_s1 + $0x4] ss:$8 sm:$0x7] }
   0xa   :  { %1294 = vmatpush.msk.msrb.mxu0 %vm200_vm11, %v1522_v47  ;;  %1340 = vmatpush.msk.msra.mxu3 %vm200_vm11, %v181_v46  ;;  %v187_v54 = vperm.slane %v1557_v53, 0  ;;  %v1566_v61 = vld [vmem:[#allocation2 + $0x100] sm:$0xff] }
   0xc   :  { %1291 = vmatpush.msk.msrb.mxu3 %vm200_vm11, %v182_v48 }
  0x86   :  { %v1502_v4 = vpop.f32.mrf.mxu1  ;;  %v1504_v5 = vpop.f32.mrf.mxu0 }
  0x87   :  { %v72_v6 = vsub.f32 %v31_v0, %v1502_v4  ;;  %v71_v7 = vsub.f32 %v30_v1, %v1504_v5  ;;  %v1570_v1 = vld [vmem:[#allocation2 + $0x108] sm:$0xff] }
  0x89   :  { %v74_v8 = vmul.f32 %v72_v6, %v72_v6  ;;  %v73_v9 = vmul.f32 %v71_v7, %v71_v7 }
  0x8b   :  { %89 = vmatpush.msrb.mxu1 %v74_v8 }
  0x8d   :  { %90 = vmatpush.msrb.mxu1 %v73_v9 }
  0x8e   :  { %1283 = vmatmul.msk.f32.vlgmr.msrb.gmra.mxu1 %vm41_vm0, %v32_v3 }
  0x96   :  { %1284 = vmatmul.msk.f32.gmra.mxu1 %vm41_vm0, %v33_v2 }
 0x10b   :  { %v92_v10 = vpop.f32.mrf.mxu1 }
 0x10c   :  { %v93_v11 = vadd.f32 1e-05, %v92_v10 }
 0x10e   :  { %1382 = vrsqrt.f32 %v93_v11  ;;  %vm105_vm2 = vcmp.eq.f32.partialorder %v93_v11, inf  ;;  %v108_v24 = vand.u32 2147483648, %v93_v11  ;;  %vm128_vm3 = vweird.f32 %v93_v11 }
 0x10f   :  { %vm107_vm4 = vcmp.eq.f32.partialorder %v93_v11, 0.0 }
 0x113   :  { %v95_v12 = vpop.f32.mrf.mxu1 }
 0x114   :  { %v1383_v13 = vpop.eup %1382  ;;  %v96_v14 = vadd.f32 1e-05, %v95_v12 }
 0x115   :  { %v99_v15 = vmul.f32 %v1383_v13, %v93_v11  ;;  %vm129_vm1 = vweird.f32 %v1383_v13 }
 0x116   :  { %1384 = vrsqrt.f32 %v96_v14  ;;  %vm130_vm5 = vmor %vm128_vm3, %vm129_vm1  ;;  %vm138_vm7 = vweird.f32 %v96_v14  ;;  %vm117_vm9 = vcmp.eq.f32.partialorder %v96_v14, inf  ;;  %v120_v36 = vand.u32 2147483648, %v96_v14 }
 0x117   :  { %v100_v16 = vmul.f32 %v1383_v13, %v99_v15  ;;  %vm119_vm10 = vcmp.eq.f32.partialorder %v96_v14, 0.0 }
 0x119   :  { %v101_v17 = vmul.f32 0.5, %v100_v16 }
 0x11b   :  { %v102_v18 = vsub.f32 1.5, %v101_v17 }
 0x11c   :  { %v1385_v19 = vpop.eup %1384 }
 0x11d   :  { %v111_v20 = vmul.f32 %v1385_v19, %v96_v14  ;;  %v103_v21 = vmul.f32 %v1383_v13, %v102_v18  ;;  %vm139_vm6 = vweird.f32 %v1385_v19 }
 0x11e   :  { %vm140_vm8 = vmor %vm138_vm7, %vm139_vm6 }
 0x11f   :  { %v112_v22 = vmul.f32 %v1385_v19, %v111_v20  ;;  %v104_v23 = vmul.f32 %v103_v21, %v93_v11  ;;  %v131_v29 = vsel %vm130_vm5, %v1383_v13, %v103_v21 }
 0x120   :  { %v142_v32 = vmul.f32 %v131_v29, %v71_v7 }
 0x121   :  { %v113_v25 = vmul.f32 0.5, %v112_v22  ;;  %v106_v26 = vsel %vm105_vm2, %v93_v11, %v104_v23 }
 0x122   :  { %v1510_v27 = vsel %vm107_vm4, %v108_v24, %v106_v26  ;;  %v145_v40 = vmul.f32 %v1361_v31, %v142_v32  ;;  %v385_v24 = vld [vmem:[#allocation2 + $0x18] sm:$0xff]  ;;  %v383_v26 = vld [vmem:[#allocation2 + $0x8] sm:$0xff] }
 0x123   :  { %v114_v28 = vsub.f32 1.5, %v113_v25  ;;  %v384_v25 = vld [vmem:[#allocation2 + $0x10] sm:$0xff] }
 0x124   :  { %v148_v43 = vadd.f32 %v1362_v39, %v145_v40 }
 0x125   :  { %v115_v30 = vmul.f32 %v1385_v19, %v114_v28  ;;  %v382_v28 = vld [vmem:[#allocation2] sm:$0xff] }
 0x127   :  { %v116_v33 = vmul.f32 %v115_v30, %v96_v14  ;;  %v141_v34 = vsel %vm140_vm8, %v1385_v19, %v115_v30  ;;  %v188_v19 = vperm.slane %v1557_v53, 1 }
 0x128   :  { %v143_v35 = vmul.f32 %v141_v34, %v72_v6 }
 0x129   :  { %v118_v37 = vsel %vm117_vm9, %v96_v14, %v116_v33 }
 0x12a   :  { %v146_v38 = vmul.f32 %v1361_v31, %v143_v35  ;;  %v1512_v41 = vsel %vm119_vm10, %v120_v36, %v118_v37 }
 0x12c   :  { %v149_v42 = vadd.f32 %v1362_v39, %v146_v38 }
 0x12e   :  { %170 = vmatpush.msra.mxu2 %v149_v42 }
 0x130   :  { %171 = vmatpush.msra.mxu2 %v148_v43 }
 0x131   :  { %1285 = vmatmul.msk.f32.vlgmr.msra.gmra.mxu2 %vm41_vm0, %v34_v44 }
 0x132   :  { %1288 = vmatpush.msk.msrb.mxu2 %vm200_vm11, %v181_v46 }
 0x139   :  { %1286 = vmatmul.msk.f32.gmra.mxu2 %vm41_vm0, %v35_v45 }
 0x1b4   :  { %v1532_v49 = vpop.f32.mrf.mxu2 }
 0x1b5   :  { %v1535_v50 = vsub.f32 %v148_v43, %v1532_v49 }
 0x1b7   :  { %1289 = vmatmul.msk.f32.vlgmr.msrb.gmra.mxu2 %vm193_vm12, %v1535_v50  ;;  %1295 = vmatmul.msk.f32.vlgmr.msrb.gmra.mxu0 %vm193_vm12, %v1535_v50 }
 0x1bc   :  { %v1541_v51 = vpop.f32.mrf.mxu2 }
 0x1bd   :  { %v1544_v52 = vsub.f32 %v149_v42, %v1541_v51 }
 0x1bf   :  { %1290 = vmatmul.msk.f32.vlgmr.msra.gmra.mxu3 %vm193_vm12, %v1544_v52  ;;  %1296 = vmatmul.msk.f32.gmra.mxu0 %vm193_vm12, %v1544_v52 }
 0x1c0   :  { %405 = vmatpush.msra.mxu3 %v385_v24 }
 0x1c2   :  { %406 = vmatpush.msra.mxu3 %v384_v25 }
 0x1c4   :  { %407 = vmatpush.msra.mxu3 %v383_v26 }
 0x1c6   :  { %408 = vmatpush.msra.mxu3 %v382_v28 }
 0x1c7   :  { %1292 = vmatmul.msk.f32.vlgmr.msrb.gmra.mxu3 %vm193_vm12, %v1535_v50 }
 0x1cf   :  { %1293 = vmatmul.msk.f32.gmra.mxu3 %vm193_vm12, %v1544_v52 }
 0x23a   :  { %v227_v57 = vpop.f32.mrf.mxu2 }
 0x23b   :  { %v228_v58 = vadd.f32 %v227_v57, %v187_v54 }
 0x242   :  { %v230_v55 = vpop.f32.mrf.mxu3 }
 0x243   :  { %v231_v56 = vadd.f32 %v230_v55, %v187_v54 }
 0x245   :  { %285 = vrot.lane.b32.xlu0 %v231_v56, %s1466_s29  ;;  %v1349_v21 = vpack.i.bf16 %v228_v58, %v231_v56 }
 0x24a   :  { %v250_v17 = vpop.f32.mrf.mxu3 }
 0x24b   :  { %v1578_v22 = vadd.f32 %v250_v17, %v188_v19  ;;  %v280_v17 = vmul.f32 0.5, %v1544_v52 }
 0x24d   :  { %283 = vrot.lane.b32.xlu0 %v228_v58, %s1466_s29 }
 0x252   :  { %v253_v18 = vpop.f32.mrf.mxu3 }
 0x253   :  { %v254_v20 = vadd.f32 %v253_v18, %v188_v19 }
 0x255   :  { %v1354_v23 = vpack.i.bf16 %v1578_v22, %v254_v20 }
 0x2b7   :  { %v286_v59 = vpop.permute.xlu0 %285 }
 0x2b8   :  { %1297 = vmatpush.xpose.msk.msra.mxu1 %vm287_vm13, %v286_v59 }
 0x2bf   :  { %v284_v60 = vpop.permute.xlu0 %283 }
 0x2c0   :  { %1298 = vmatpush.xpose.msk.msra.mxu1 %vm287_vm13, %v284_v60 }
 0x2c3   :  { %1299 = vmatmul.msk.f32.vlgmr.msra.gmra.mxu1 %vm287_vm13, %v228_v58 }
 0x2cb   :  { %1300 = vmatmul.msk.f32.gmra.mxu1 %vm287_vm13, %v231_v56 }
 0x340   :  { %v313_v62 = vpop.f32.mrf.mxu1 }
 0x341   :  { %v314_v63 = vadd.f32 %v313_v62, %v1566_v61 }
 0x343   :  { %v319_v0 = vsel %vm41_vm0, %v314_v63, -inf }
 0x344   :  { %320 = vmax.xlane.f32.xlu1 %v319_v0 }
 0x348   :  { %v316_v2 = vpop.f32.mrf.mxu1 }
 0x349   :  { %v317_v3 = vadd.f32 %v316_v2, %v1570_v1 }
 0x34b   :  { %v322_v6 = vsel %vm41_vm0, %v317_v3, -inf }
 0x34c   :  { %323 = vmax.xlane.f32.xlu1 %v322_v6 }
 0x365   :  { %603 = vrot.lane.b32.xlu1 %v228_v58, %s1467_s30 }
 0x3b7   :  { %v321_v7 = vpop.xlane.xlu1 %320 }
 0x3b8   :  { %v325_v8 = vsub.f32 %v314_v63, %v321_v7 }
 0x3ba   :  { %v327_v9 = vmul.f32 1.442695, %v325_v8 }
 0x3bc   :  { %1386 = vpow2.f32 %v327_v9  ;;  %v1363_v9 = vld [vmem:[#allocation2 + $0x110] ss:$0 sm:$0xff] }
 0x3bf   :  { %v324_v10 = vpop.xlane.xlu1 %323 }
 0x3c0   :  { %v326_v11 = vsub.f32 %v317_v3, %v324_v10 }
 0x3c2   :  { %v1387_v12 = vpop.eup %1386  ;;  %v329_v13 = vmul.f32 1.442695, %v326_v11 }
 0x3c3   :  { %v331_v14 = vsel %vm41_vm0, %v1387_v12, 0.0 }
 0x3c4   :  { %1388 = vpow2.f32 %v329_v13  ;;  %332 = vadd.xlane.f32.xlu2 %v331_v14 }
 0x3ca   :  { %v1389_v15 = vpop.eup %1388 }
 0x3cb   :  { %v334_v16 = vsel %vm41_vm0, %v1389_v15, 0.0 }
 0x3cc   :  { %335 = vadd.xlane.f32.xlu0 %v334_v16 }
 0x3d7   :  { %v604_v40 = vpop.permute.xlu1 %603 }
 0x3dc   :  { %1350 = vrot.lane.b32.xlu2 %v1349_v21, %s1468_s4 }
 0x3e0   :  { %1355 = vrot.lane.b32.xlu0 %v1354_v23, %s1466_s29 }
 0x3e4   :  { %605 = vrot.lane.b32.xlu2 %v231_v56, %s1467_s30 }
 0x437   :  { %v333_v29 = vpop.xlane.xlu2 %332 }
 0x438   :  { %1390 = vrcp.f32 %v333_v29 }
 0x43e   :  { %v1391_v32 = vpop.eup %1390 }
 0x43f   :  { %v1351_v30 = vpop.permute.xlu2 %1350  ;;  %v336_v31 = vpop.xlane.xlu0 %335  ;;  %v339_v35 = vmul.f32 %v1391_v32, %v1387_v12  ;;  %v279_v12 = vmul.f32 0.5, %v1535_v50 }
 0x440   :  { %v1352_v33 = vunpack.i.l.bf16 %v1351_v30  ;;  %v1353_v34 = vunpack.i.h.bf16 %v1351_v30  ;;  %1392 = vrcp.f32 %v336_v31  ;;  %v1469_v30 = vmov 4.0  }
 0x442   :  { %367 = vmatpush.msra.mxu2 %v1352_v33 }
 0x444   :  { %368 = vmatpush.msra.mxu2 %v1353_v34 }
 0x445   :  { %1301 = vmatmul.msk.f32.vlgmr.msra.gmra.mxu2 %vm41_vm0, %v339_v35 }
 0x446   :  { %1310 = vmatpush.xpose.msk.msrb.mxu2 %vm287_vm13, %v254_v20  ;;  %v1393_v36 = vpop.eup %1392 }
 0x447   :  { %v340_v37 = vmul.f32 %v1393_v36, %v1389_v15  ;;  %v606_v43 = vpop.permute.xlu2 %605 }
 0x44a   :  { %1311 = vmatpush.xpose.msk.msrb.mxu2 %vm287_vm13, %v1578_v22 }
 0x44d   :  { %1302 = vmatmul.msk.f32.gmra.mxu2 %vm41_vm0, %v340_v37 }
 0x452   :  { %v1356_v38 = vpop.permute.xlu0 %1355 }
 0x453   :  { %v1357_v39 = vunpack.i.l.bf16 %v1356_v38  ;;  %v1358_v42 = vunpack.i.h.bf16 %v1356_v38 }
 0x455   :  { %1312 = vmatmul.msk.f32.vlgmr.msrb.gmra.mxu2 %vm287_vm13, %v604_v40  ;;  %688 = vmatpush.msrb.mxu3 %v1357_v39 }
 0x457   :  { %689 = vmatpush.msrb.mxu3 %v1358_v42 }
 0x45d   :  { %1313 = vmatmul.msk.f32.gmra.mxu2 %vm287_vm13, %v606_v43 }
 0x4c8   :  { %v370_v44 = vpop.f32.mrf.mxu2 }
 0x4c9   :  { %1303 = vmatmul.msk.f32.vlgmr.msra.gmra.mxu3 %vm287_vm13, %v370_v44 }
 0x4d0   :  { %v373_v45 = vpop.f32.mrf.mxu2 }
 0x4d1   :  { %1304 = vmatmul.msk.f32.gmra.mxu3 %vm287_vm13, %v373_v45 }
 0x4d8   :  { %v634_v46 = vpop.f32.mrf.mxu2 }
 0x4d9   :  { %v635_v48 = vadd.f32 %v634_v46, %v1566_v61 }
 0x4db   :  { %v640_v54 = vsel %vm41_vm0, %v635_v48, -inf }
 0x4dc   :  { %641 = vmax.xlane.f32.xlu2 %v640_v54 }
 0x4e0   :  { %v637_v55 = vpop.f32.mrf.mxu2 }
 0x4e1   :  { %v638_v56 = vadd.f32 %v637_v55, %v1570_v1 }
 0x4e3   :  { %v643_v57 = vsel %vm41_vm0, %v638_v56, -inf }
 0x4e4   :  { %644 = vmax.xlane.f32.xlu1 %v643_v57 }
 0x4fd   :  { %921 = vrot.lane.b32.xlu1 %v254_v20, %s1467_s30 }
 0x505   :  { %917 = vrot.lane.b32.xlu1 %v254_v20, %s1468_s4 }
 0x54c   :  { %v410_v10 = vpop.f32.mrf.mxu3 }
 0x54d   :  { %v411_v11 = vadd.f32 %v1363_v9, %v410_v10 }
 0x54f   :  { %v642_v58 = vpop.xlane.xlu2 %641  ;;  %v416_v13 = vadd.f32 %v411_v11, %v279_v12 }
 0x550   :  { %v646_v59 = vsub.f32 %v635_v48, %v642_v58 }
 0x551   :  { %v418_v15 = vsel %vm193_vm12, %v416_v13, 0.0 }
 0x552   :  { %v648_v60 = vmul.f32 1.442695, %v646_v59 }
 0x554   :  { %1394 = vpow2.f32 %v648_v60  ;;  %v413_v14 = vpop.f32.mrf.mxu3 }
 0x555   :  { %v414_v16 = vadd.f32 %v1363_v9, %v413_v14 }
 0x557   :  { %v645_v62 = vpop.xlane.xlu1 %644  ;;  %v417_v18 = vadd.f32 %v414_v16, %v280_v17  ;;  %v273_v17 = vpop.f32.mrf.mxu0 }
 0x558   :  { %v647_v63 = vsub.f32 %v638_v56, %v645_v62 }
 0x559   :  { %v421_v19 = vsel %vm193_vm12, %v417_v18, 0.0 }
 0x55a   :  { %v1395_v0 = vpop.eup %1394  ;;  %v650_v2 = vmul.f32 1.442695, %v647_v63 }
 0x55b   :  { %v652_v3 = vsel %vm41_vm0, %v1395_v0, 0.0 }
 0x55c   :  { %1396 = vpow2.f32 %v650_v2  ;;  %653 = vadd.xlane.f32.xlu0 %v652_v3 }
 0x562   :  { %v1397_v6 = vpop.eup %1396 }
 0x563   :  { %v655_v7 = vsel %vm41_vm0, %v1397_v6, 0.0 }
 0x564   :  { %656 = vadd.xlane.f32.xlu2 %v655_v7 }
 0x56f   :  { %v922_v8 = vpop.permute.xlu1 %921 }
 0x570   :  { %1323 = vmatpush.xpose.msk.msra.mxu3 %vm287_vm13, %v922_v8  ;;  %919 = vrot.lane.b32.xlu0 %v1578_v22, %s1467_s30 }
 0x577   :  { %v918_v29 = vpop.permute.xlu1 %917 }
 0x57c   :  { %915 = vrot.lane.b32.xlu2 %v1578_v22, %s1468_s4 }
 0x59a   :  { %419 = vadd.xlane.f32.xlu0 %v418_v15 }
 0x5a5   :  { %422 = vadd.xlane.f32.xlu2 %v421_v19 }
 0x5cf   :  { %v654_v20 = vpop.xlane.xlu0 %653 }
 0x5d0   :  { %1398 = vrcp.f32 %v654_v20  ;;  %v1365_v20 = vld [vmem:[#allocation2 + $0x112] ss:$0 sm:$0xff] }
 0x5d6   :  { %v1399_v21 = vpop.eup %1398 }
 0x5d7   :  { %v660_v22 = vmul.f32 %v1399_v21, %v1395_v0  ;;  %v657_v23 = vpop.xlane.xlu2 %656 }
 0x5d8   :  { %1400 = vrcp.f32 %v657_v23 }
 0x5d9   :  { %1314 = vmatmul.msk.f32.vlgmr.msrb.gmra.mxu3 %vm41_vm0, %v660_v22  ;;  %1402 = vrcp.f32 %v1469_v30  ;;  %v704_v30 = vld [vmem:[#allocation2 + $0x28] sm:$0xff] }
 0x5de   :  { %v1401_v24 = vpop.eup %1400 }
 0x5df   :  { %v661_v25 = vmul.f32 %v1401_v24, %v1397_v6  ;;  %v916_v28 = vpop.permute.xlu2 %915  ;;  %v1403_v31 = vpop.eup %1402 }
 0x5e0   :  { %v425_v32 = vmul.f32 4.0, %v1403_v31  ;;  %vm429_vm14 = vweird.f32 %v1403_v31 }
 0x5e1   :  { %1315 = vmatmul.msk.f32.gmra.mxu3 %vm41_vm0, %v661_v25  ;;  %v706_v25 = vld [vmem:[#allocation2 + $0x38] sm:$0xff] }
 0x5e2   :  { %v920_v26 = vpop.permute.xlu0 %919  ;;  %v426_v33 = vsub.f32 1.0, %v425_v32  ;;  %v276_v32 = vpop.f32.mrf.mxu0 }
 0x5e3   :  { %1324 = vmatpush.xpose.msk.msra.mxu3 %vm287_vm13, %v920_v26 }
 0x5e4   :  { %v427_v34 = vmul.f32 %v1403_v31, %v426_v33  ;;  %v189_v33 = vperm.slane %v1557_v53, 2 }
 0x5e6   :  { %v428_v35 = vadd.f32 %v1403_v31, %v427_v34  ;;  %v703_v34 = vld [vmem:[#allocation2 + $0x20] sm:$0xff] }
 0x5e8   :  { %v1615_v36 = vsel %vm429_vm14, %v1403_v31, %v428_v35 }
 0x5e9   :  { %1325 = vmatmul.msk.f32.vlgmr.msra.gmra.mxu3 %vm287_vm13, %v916_v28  ;;  %v705_v28 = vld [vmem:[#allocation2 + $0x30] sm:$0xff] }
 0x5f1   :  { %1326 = vmatmul.msk.f32.gmra.mxu3 %vm287_vm13, %v918_v29 }
 0x60d   :  { %v420_v37 = vpop.xlane.xlu0 %419 }
 0x60e   :  { %v431_v38 = vmul.f32 %v1615_v36, %v420_v37  ;;  %v277_v37 = vadd.f32 %v276_v32, %v189_v33 }
 0x610   :  { %v433_v39 = vsub.f32 %v416_v13, %v431_v38  ;;  %v1364_v13 = vld [vmem:[#allocation2 + $0x111] ss:$0 sm:$0xff] }
 0x612   :  { %v435_v40 = vmul.f32 %v433_v39, %v433_v39 }
 0x614   :  { %v437_v42 = vsel %vm193_vm12, %v435_v40, 0.0 }
 0x615   :  { %438 = vadd.xlane.f32.xlu1 %v437_v42 }
 0x618   :  { %v423_v43 = vpop.xlane.xlu2 %422 }
 0x619   :  { %v432_v44 = vmul.f32 %v1615_v36, %v423_v43 }
 0x61b   :  { %v434_v45 = vsub.f32 %v417_v18, %v432_v44 }
 0x61d   :  { %v436_v46 = vmul.f32 %v434_v45, %v434_v45 }
 0x61f   :  { %v440_v48 = vsel %vm193_vm12, %v436_v46, 0.0 }
 0x620   :  { %441 = vadd.xlane.f32.xlu0 %v440_v48 }
 0x634   :  { %480 = vrot.lane.b32.xlu0 %v1522_v47, %s1466_s29 }
 0x65c   :  { %v1623_v54 = vpop.f32.mrf.mxu3 }
 0x664   :  { %v1625_v55 = vpop.f32.mrf.mxu3 }
 0x66c   :  { %v948_v56 = vpop.f32.mrf.mxu3 }
 0x66d   :  { %v1628_v57 = vadd.f32 %v948_v56, %v1566_v61 }
 0x66f   :  { %v954_v58 = vsel %vm41_vm0, %v1628_v57, -inf }
 0x670   :  { %955 = vmax.xlane.f32.xlu2 %v954_v58 }
 0x674   :  { %v951_v59 = vpop.f32.mrf.mxu3 }
 0x675   :  { %v1633_v60 = vadd.f32 %v951_v59, %v1570_v1 }
 0x677   :  { %v957_v62 = vsel %vm41_vm0, %v1633_v60, -inf }
 0x678   :  { %958 = vmax.xlane.f32.xlu1 %v957_v62 }
 0x688   :  { %v439_v63 = vpop.xlane.xlu1 %438 }
 0x689   :  { %v443_v0 = vmul.f32 %v439_v63, %v1615_v36  ;;  %v601_v63 = vmul.f32 0.3, %v1535_v50 }
 0x68b   :  { %v445_v2 = vadd.f32 1e-05, %v443_v0 }
 0x68d   :  { %1404 = vrsqrt.f32 %v445_v2  ;;  %vm453_vm1 = vweird.f32 %v445_v2 }
 0x693   :  { %v1405_v3 = vpop.eup %1404  ;;  %v442_v61 = vpop.xlane.xlu0 %441 }
 0x694   :  { %v448_v6 = vmul.f32 %v1405_v3, %v445_v2  ;;  %v444_v7 = vmul.f32 %v442_v61, %v1615_v36  ;;  %vm454_vm15 = vweird.f32 %v1405_v3  ;;  %v602_v61 = vmul.f32 0.3, %v1544_v52 }
 0x695   :  { %vm455_vm2 = vmor %vm453_vm1, %vm454_vm15 }
 0x696   :  { %v449_v8 = vmul.f32 %v1405_v3, %v448_v6  ;;  %v446_v9 = vadd.f32 1e-05, %v444_v7 }
 0x698   :  { %v450_v10 = vmul.f32 0.5, %v449_v8  ;;  %1406 = vrsqrt.f32 %v446_v9  ;;  %vm463_vm4 = vweird.f32 %v446_v9 }
 0x69a   :  { %v451_v1 = vsub.f32 1.5, %v450_v10 }
 0x69c   :  { %v452_v11 = vmul.f32 %v1405_v3, %v451_v1 }
 0x69e   :  { %v1407_v12 = vpop.eup %1406  ;;  %v456_v14 = vsel %vm455_vm2, %v1405_v3, %v452_v11 }
 0x69f   :  { %v467_v15 = vmul.f32 %v456_v14, %v433_v39  ;;  %v458_v16 = vmul.f32 %v1407_v12, %v446_v9  ;;  %vm464_vm3 = vweird.f32 %v1407_v12  ;;  %v274_v39 = vadd.f32 %v273_v17, %v189_v33 }
 0x6a0   :  { %vm465_vm5 = vmor %vm463_vm4, %vm464_vm3 }
 0x6a1   :  { %v459_v18 = vmul.f32 %v1407_v12, %v458_v16  ;;  %v470_v19 = vmul.f32 %v1364_v13, %v467_v15 }
 0x6a3   :  { %v460_v21 = vmul.f32 0.5, %v459_v18  ;;  %v1639_v24 = vadd.f32 %v1365_v20, %v470_v19 }
 0x6a5   :  { %v461_v22 = vsub.f32 1.5, %v460_v21 }
 0x6a6   :  { %v481_v23 = vpop.permute.xlu0 %480 }
 0x6a7   :  { %v462_v26 = vmul.f32 %v1407_v12, %v461_v22  ;;  %1305 = vmatpush.msk.msra.mxu0 %vm200_vm11, %v481_v23  ;;  %v1678_v23 = vld [vmem:[%s1828_s1 + $0x14] ss:$0 sm:$0xff] }
 0x6a8   :  { %1306 = vmatmul.msk.f32.vlgmr.msra.gmra.mxu0 %vm193_vm12, %v1639_v24 }
 0x6a9   :  { %v466_v29 = vsel %vm465_vm5, %v1407_v12, %v462_v26  ;;  %726 = vmatpush.msrb.mxu0 %v706_v25  ;;  %v479_v25 = vld [vmem:[#allocation2 + $0x78] sm:$0xff]  ;;  %v478_v26 = vld [vmem:[#allocation2 + $0x70] sm:$0xff] }
 0x6aa   :  { %v468_v31 = vmul.f32 %v466_v29, %v434_v45  ;;  %538 = vmatpush.msrb.mxu1 %v479_v25  ;;  %v476_v29 = vld [vmem:[#allocation2 + $0x60] sm:$0xff] }
 0x6ab   :  { %727 = vmatpush.msrb.mxu0 %v705_v28  ;;  %v477_v28 = vld [vmem:[#allocation2 + $0x68] sm:$0xff] }
 0x6ac   :  { %v471_v35 = vmul.f32 %v1364_v13, %v468_v31  ;;  %539 = vmatpush.msrb.mxu1 %v478_v26 }
 0x6ad   :  { %728 = vmatpush.msrb.mxu0 %v704_v30 }
 0x6ae   :  { %v1645_v38 = vadd.f32 %v1365_v20, %v471_v35  ;;  %540 = vmatpush.msrb.mxu1 %v477_v28  ;;  %v913_v28 = vmul.f32 0.2, %v1535_v50 }
 0x6af   :  { %729 = vmatpush.msrb.mxu0 %v703_v34 }
 0x6b0   :  { %1307 = vmatmul.msk.f32.gmra.mxu0 %vm193_vm12, %v1645_v38  ;;  %541 = vmatpush.msrb.mxu1 %v476_v29 }
 0x6b1   :  { %996 = vmatpush.msra.mxu0 %v277_v37 }
 0x6b3   :  { %997 = vmatpush.msra.mxu0 %v274_v39 }
 0x6b8   :  { %1316 = vmatmul.msk.f32.vlgmr.msrb.gmra.mxu0 %vm287_vm13, %v1623_v54 }
 0x6c0   :  { %1317 = vmatmul.msk.f32.gmra.mxu0 %vm287_vm13, %v1625_v55 }
 0x6e3   :  { %v956_v53 = vpop.xlane.xlu2 %955 }
 0x6e4   :  { %v960_v40 = vsub.f32 %v1628_v57, %v956_v53  ;;  %v1366_v57 = vld [vmem:[#allocation2 + $0x116] ss:$0 sm:$0xff] }
 0x6e6   :  { %v962_v42 = vmul.f32 1.442695, %v960_v40 }
 0x6e8   :  { %1408 = vpow2.f32 %v962_v42 }
 0x6eb   :  { %v959_v43 = vpop.xlane.xlu1 %958 }
 0x6ec   :  { %v961_v44 = vsub.f32 %v1633_v60, %v959_v43 }
 0x6ee   :  { %v1409_v45 = vpop.eup %1408  ;;  %v964_v46 = vmul.f32 1.442695, %v961_v44 }
 0x6ef   :  { %v966_v48 = vsel %vm41_vm0, %v1409_v45, 0.0 }
 0x6f0   :  { %1410 = vpow2.f32 %v964_v46  ;;  %967 = vadd.xlane.f32.xlu2 %v966_v48 }
 0x6f6   :  { %v1411_v56 = vpop.eup %1410 }
 0x6f7   :  { %v969_v54 = vsel %vm41_vm0, %v1411_v56, 0.0 }
 0x6f8   :  { %970 = vadd.xlane.f32.xlu0 %v969_v54 }
 0x725   :  { %v1657_v58 = vpop.f32.mrf.mxu0 }
 0x72d   :  { %v1659_v55 = vpop.f32.mrf.mxu0 }
 0x735   :  { %v731_v59 = vpop.f32.mrf.mxu0 }
 0x736   :  { %v732_v62 = vadd.f32 %v1366_v57, %v731_v59 }
 0x738   :  { %v737_v60 = vadd.f32 %v732_v62, %v601_v63  ;;  %v1013_v63 = vld [vmem:[#allocation2 + $0x50] sm:$0xff] }
 0x73a   :  { %v739_v0 = vsel %vm193_vm12, %v737_v60, 0.0 }
 0x73b   :  { %740 = vadd.xlane.f32.xlu1 %v739_v0  ;;  %v1012_v0 = vld [vmem:[#allocation2 + $0x48] sm:$0xff] }
 0x73d   :  { %v734_v2 = vpop.f32.mrf.mxu0 }
 0x73e   :  { %v735_v3 = vadd.f32 %v1366_v57, %v734_v2  ;;  %v1014_v57 = vld [vmem:[#allocation2 + $0x58] sm:$0xff] }
 0x740   :  { %v738_v6 = vadd.f32 %v735_v3, %v602_v61  ;;  %v1011_v61 = vld [vmem:[#allocation2 + $0x40] sm:$0xff] }
 0x742   :  { %v742_v7 = vsel %vm193_vm12, %v738_v6, 0.0 }
 0x743   :  { %743 = vadd.xlane.f32.xlu2 %v742_v7 }
 0x763   :  { %v968_v8 = vpop.xlane.xlu2 %967 }
 0x764   :  { %1412 = vrcp.f32 %v968_v8 }
 0x76a   :  { %v1413_v9 = vpop.eup %1412 }
 0x76b   :  { %v974_v10 = vmul.f32 %v1413_v9, %v1409_v45  ;;  %v971_v1 = vpop.xlane.xlu0 %970 }
 0x76c   :  { %1414 = vrcp.f32 %v971_v1 }
 0x76d   :  { %1327 = vmatmul.msk.f32.vlgmr.msra.gmra.mxu0 %vm41_vm0, %v974_v10  ;;  %v1368_v10 = vld [vmem:[#allocation2 + $0x118] ss:$0 sm:$0xff] }
 0x772   :  { %v1415_v11 = vpop.eup %1414 }
 0x773   :  { %v975_v12 = vmul.f32 %v1415_v11, %v1411_v56 }
 0x775   :  { %1328 = vmatmul.msk.f32.gmra.mxu0 %vm41_vm0, %v975_v12 }
 0x7ae   :  { %v741_v13 = vpop.xlane.xlu1 %740 }
 0x7af   :  { %v745_v14 = vmul.f32 %v741_v13, %v1615_v36 }
 0x7b1   :  { %v747_v15 = vsub.f32 %v737_v60, %v745_v14 }
 0x7b3   :  { %v749_v16 = vmul.f32 %v747_v15, %v747_v15 }
 0x7b5   :  { %v751_v17 = vsel %vm193_vm12, %v749_v16, 0.0  ;;  %v1369_v16 = vld [vmem:[#allocation2 + $0x113] ss:$0 sm:$0xff] }
 0x7b6   :  { %752 = vadd.xlane.f32.xlu1 %v751_v17  ;;  %v744_v18 = vpop.xlane.xlu2 %743 }
 0x7b7   :  { %v746_v19 = vmul.f32 %v744_v18, %v1615_v36 }
 0x7b9   :  { %v1670_v20 = vsub.f32 %v738_v6, %v746_v19 }
 0x7bb   :  { %v750_v21 = vmul.f32 %v1670_v20, %v1670_v20 }
 0x7bd   :  { %v754_v22 = vsel %vm193_vm12, %v750_v21, 0.0 }
 0x7be   :  { %755 = vadd.xlane.f32.xlu2 %v754_v22  ;;  %v1370_v22 = vld [vmem:[#allocation2 + $0x11c] ss:$0 sm:$0xff] }
 0x7cf   :  { %483 = vrot.lane.b32.xlu1 %v1678_v23, %s1466_s29 }
 0x7d6   :  { %793 = vrot.lane.b32.xlu2 %v1522_v47, %s1468_s4 }
 0x7ea   :  { %v999_v14 = vpop.f32.mrf.mxu0 }
 0x829   :  { %v753_v30 = vpop.xlane.xlu1 %752 }
 0x82a   :  { %v757_v31 = vmul.f32 %v753_v30, %v1615_v36 }
 0x82c   :  { %v759_v32 = vadd.f32 1e-05, %v757_v31 }
 0x82e   :  { %1416 = vrsqrt.f32 %v759_v32  ;;  %vm767_vm6 = vweird.f32 %v759_v32 }
 0x831   :  { %v756_v33 = vpop.xlane.xlu2 %755 }
 0x832   :  { %v758_v34 = vmul.f32 %v756_v33, %v1615_v36  ;;  %v914_v33 = vmul.f32 0.2, %v1544_v52  ;;  %v791_v52 = vld [vmem:[#allocation2 + $0x90] sm:$0xff] }
 0x834   :  { %v1417_v35 = vpop.eup %1416  ;;  %v760_v37 = vadd.f32 1e-05, %v758_v34 }
 0x835   :  { %v762_v39 = vmul.f32 %v1417_v35, %v759_v32  ;;  %vm768_vm0 = vweird.f32 %v1417_v35 }
 0x836   :  { %1418 = vrsqrt.f32 %v760_v37  ;;  %vm769_vm7 = vmor %vm767_vm6, %vm768_vm0  ;;  %vm777_vm9 = vweird.f32 %v760_v37 }
 0x837   :  { %v763_v53 = vmul.f32 %v1417_v35, %v762_v39 }
 0x839   :  { %v794_v40 = vpop.permute.xlu2 %793  ;;  %v764_v43 = vmul.f32 0.5, %v763_v53  ;;  %v792_v53 = vld [vmem:[#allocation2 + $0x98] sm:$0xff] }
 0x83a   :  { %1318 = vmatpush.msk.msra.mxu1 %vm200_vm11, %v794_v40  ;;  %850 = vmatpush.msra.mxu2 %v792_v53  ;;  %v790_v40 = vld [vmem:[#allocation2 + $0x88] sm:$0xff] }
 0x83b   :  { %v765_v45 = vsub.f32 1.5, %v764_v43 }
 0x83c   :  { %v1419_v42 = vpop.eup %1418  ;;  %851 = vmatpush.msra.mxu2 %v791_v52 }
 0x83d   :  { %v772_v44 = vmul.f32 %v1419_v42, %v760_v37  ;;  %v766_v59 = vmul.f32 %v1417_v35, %v765_v45  ;;  %vm778_vm8 = vweird.f32 %v1419_v42 }
 0x83e   :  { %vm779_vm10 = vmor %vm777_vm9, %vm778_vm8  ;;  %852 = vmatpush.msra.mxu2 %v790_v40 }
 0x83f   :  { %v773_v46 = vmul.f32 %v1419_v42, %v772_v44  ;;  %v770_v2 = vsel %vm769_vm7, %v1417_v35, %v766_v59 }
 0x840   :  { %v781_v6 = vmul.f32 %v770_v2, %v747_v15  ;;  %v1002_v15 = vpop.f32.mrf.mxu0 }
 0x841   :  { %v484_v48 = vpop.permute.xlu1 %483  ;;  %v774_v62 = vmul.f32 0.5, %v773_v46 }
 0x842   :  { %v512_v56 = vadd.f32 %v1657_v58, %v484_v48  ;;  %v515_v60 = vadd.f32 %v1659_v55, %v484_v48  ;;  %v1367_v58 = vld [vmem:[#allocation2 + $0x117] ss:$0 sm:$0xff] }
 0x843   :  { %v775_v3 = vsub.f32 1.5, %v774_v62  ;;  %v784_v9 = vmul.f32 %v1367_v58, %v781_v6 }
 0x844   :  { %v517_v54 = vmax.f32 %v512_v56, 0.0  ;;  %v518_v7 = vmax.f32 %v515_v60, 0.0 }
 0x845   :  { %v776_v8 = vmul.f32 %v1419_v42, %v775_v3  ;;  %v1691_v55 = vadd.f32 %v1368_v10, %v784_v9 }
 0x846   :  { %1308 = vmatmul.msk.f32.vlgmr.msrb.gmra.mxu1 %vm287_vm13, %v517_v54 }
 0x847   :  { %1034 = vmatpush.msrb.mxu1 %v1014_v57  ;;  %v780_v1 = vsel %vm779_vm10, %v1419_v42, %v776_v8  ;;  %v789_v42 = vld [vmem:[#allocation2 + $0x80] sm:$0xff] }
 0x848   :  { %v782_v11 = vmul.f32 %v780_v1, %v1670_v20  ;;  %853 = vmatpush.msra.mxu2 %v789_v42 }
 0x849   :  { %1035 = vmatpush.msrb.mxu1 %v1013_v63 }
 0x84a   :  { %v785_v12 = vmul.f32 %v1367_v58, %v782_v11 }
 0x84b   :  { %1036 = vmatpush.msrb.mxu1 %v1012_v0 }
 0x84c   :  { %v1696_v13 = vadd.f32 %v1368_v10, %v785_v12 }
 0x84d   :  { %1037 = vmatpush.msrb.mxu1 %v1011_v61 }
 0x84e   :  { %1309 = vmatmul.msk.f32.gmra.mxu1 %vm287_vm13, %v518_v7  ;;  %v1100_v7 = vld [vmem:[#allocation2 + $0xb8] sm:$0xff] }
 0x84f   :  { %1158 = vmatpush.msrb.mxu3 %v1100_v7 }
 0x856   :  { %1319 = vmatmul.msk.f32.vlgmr.msra.gmra.mxu1 %vm193_vm12, %v1691_v55 }
 0x85e   :  { %1320 = vmatmul.msk.f32.gmra.mxu1 %vm193_vm12, %v1696_v13 }
 0x866   :  { %1329 = vmatmul.msk.f32.vlgmr.msrb.gmra.mxu1 %vm287_vm13, %v999_v14 }
 0x86e   :  { %1330 = vmatmul.msk.f32.gmra.mxu1 %vm287_vm13, %v1002_v15 }
 0x8c3   :  { %v543_v17 = vpop.f32.mrf.mxu1 }
 0x8c4   :  { %v1702_v18 = vadd.f32 %v1369_v16, %v543_v17 }
 0x8cb   :  { %v546_v19 = vpop.f32.mrf.mxu1 }
 0x8cc   :  { %v547_v37 = vadd.f32 %v1369_v16, %v546_v19  ;;  %v1371_v16 = vld [vmem:[#allocation2 + $0x11d] ss:$0 sm:$0xff] }
 0x8ce   :  { %v1713_v50 = vadd.f32 %v547_v37, %v1645_v38  ;;  %v1098_v37 = vld [vmem:[#allocation2 + $0xa8] sm:$0xff] }
 0x8d0   :  { %v554_v39 = vsel %vm193_vm12, %v1713_v50, 0.0 }
 0x8d3   :  { %v823_v20 = vpop.f32.mrf.mxu1 }
 0x8db   :  { %v826_v21 = vpop.f32.mrf.mxu1 }
 0x8e3   :  { %v1039_v25 = vpop.f32.mrf.mxu1 }
 0x8e4   :  { %v1040_v26 = vadd.f32 %v1370_v22, %v1039_v25 }
 0x8e6   :  { %v1045_v29 = vadd.f32 %v1040_v26, %v913_v28 }
 0x8e8   :  { %v1047_v30 = vsel %vm193_vm12, %v1045_v29, 0.0 }
 0x8e9   :  { %1048 = vadd.xlane.f32.xlu0 %v1047_v30 }
 0x8eb   :  { %v1042_v31 = vpop.f32.mrf.mxu1 }
 0x8ec   :  { %v1043_v32 = vadd.f32 %v1370_v22, %v1042_v31 }
 0x8ee   :  { %v1046_v34 = vadd.f32 %v1043_v32, %v914_v33 }
 0x8f0   :  { %v1050_v35 = vsel %vm193_vm12, %v1046_v34, 0.0 }
 0x8f1   :  { %1051 = vadd.xlane.f32.xlu1 %v1050_v35  ;;  %v1099_v35 = vld [vmem:[#allocation2 + $0xb0] sm:$0xff] }
 0x8f2   :  { %1159 = vmatpush.msrb.mxu3 %v1099_v35 }
 0x8f4   :  { %1160 = vmatpush.msrb.mxu3 %v1098_v37 }
 0x8fd   :  { %795 = vrot.lane.b32.xlu0 %v1678_v23, %s1468_s4 }
 0x90a   :  { %1103 = vrot.lane.b32.xlu1 %v1678_v23, %s1467_s30 }
 0x934   :  { %555 = vadd.xlane.f32.xlu1 %v554_v39  ;;  %v1097_v39 = vld [vmem:[#allocation2 + $0xa0] sm:$0xff] }
 0x935   :  { %1161 = vmatpush.msrb.mxu3 %v1097_v39 }
 0x95c   :  { %v1049_v43 = vpop.xlane.xlu0 %1048 }
 0x95d   :  { %v1053_v44 = vmul.f32 %v1049_v43, %v1615_v36 }
 0x95f   :  { %v1055_v23 = vsub.f32 %v1045_v29, %v1053_v44 }
 0x961   :  { %v1057_v45 = vmul.f32 %v1055_v23, %v1055_v23 }
 0x963   :  { %v1059_v38 = vsel %vm193_vm12, %v1057_v45, 0.0 }
 0x964   :  { %v1052_v46 = vpop.xlane.xlu1 %1051  ;;  %1060 = vadd.xlane.f32.xlu2 %v1059_v38 }
 0x965   :  { %v1054_v48 = vmul.f32 %v1052_v46, %v1615_v36  ;;  %v1374_v46 = vld [vmem:[#allocation2 + $0x11f] ss:$0 sm:$0xff] }
 0x967   :  { %v1056_v56 = vsub.f32 %v1046_v34, %v1054_v48 }
 0x969   :  { %v1058_v54 = vmul.f32 %v1056_v56, %v1056_v56 }
 0x96b   :  { %v1062_v57 = vsel %vm193_vm12, %v1058_v54, 0.0  ;;  %v1373_v54 = vld [vmem:[#allocation2 + $0x119] ss:$0 sm:$0xff] }
 0x96c   :  { %1063 = vadd.xlane.f32.xlu0 %v1062_v57 }
 0x96f   :  { %v796_v59 = vpop.permute.xlu0 %795 }
 0x970   :  { %v824_v62 = vadd.f32 %v823_v20, %v796_v59  ;;  %v827_v60 = vadd.f32 %v826_v21, %v796_v59  ;;  %v1372_v21 = vld [vmem:[#allocation2 + $0x11e] ss:$0 sm:$0xff] }
 0x972   :  { %v829_v63 = vmax.f32 %v824_v62, 0.0  ;;  %v830_v0 = vmax.f32 %v827_v60, 0.0 }
 0x974   :  { %1321 = vmatmul.msk.f32.vlgmr.msra.gmra.mxu2 %vm287_vm13, %v829_v63 }
 0x97c   :  { %1322 = vmatmul.msk.f32.gmra.mxu2 %vm287_vm13, %v830_v0  ;;  %v1104_v40 = vpop.permute.xlu1 %1103 }
 0x980   :  { %1101 = vrot.lane.b32.xlu0 %v1522_v47, %s1467_s30 }
 0x9d7   :  { %v1061_v2 = vpop.xlane.xlu2 %1060 }
 0x9d8   :  { %v1065_v3 = vmul.f32 %v1061_v2, %v1615_v36 }
 0x9da   :  { %v1067_v61 = vadd.f32 1e-05, %v1065_v3 }
 0x9dc   :  { %1420 = vrsqrt.f32 %v1067_v61  ;;  %vm1075_vm15 = vweird.f32 %v1067_v61 }
 0x9df   :  { %v1064_v58 = vpop.xlane.xlu0 %1063 }
 0x9e0   :  { %v1066_v6 = vmul.f32 %v1064_v58, %v1615_v36 }
 0x9e2   :  { %v1421_v8 = vpop.eup %1420  ;;  %v1068_v9 = vadd.f32 1e-05, %v1066_v6 }
 0x9e3   :  { %v1070_v10 = vmul.f32 %v1421_v8, %v1067_v61  ;;  %vm1076_vm14 = vweird.f32 %v1421_v8 }
 0x9e4   :  { %1422 = vrsqrt.f32 %v1068_v9  ;;  %vm1077_vm1 = vmor %vm1075_vm15, %vm1076_vm14  ;;  %vm1085_vm3 = vweird.f32 %v1068_v9 }
 0x9e5   :  { %v1071_v1 = vmul.f32 %v1421_v8, %v1070_v10 }
 0x9e7   :  { %v1072_v11 = vmul.f32 0.5, %v1071_v1 }
 0x9e9   :  { %v1073_v12 = vsub.f32 1.5, %v1072_v11 }
 0x9ea   :  { %v1423_v14 = vpop.eup %1422 }
 0x9eb   :  { %v1074_v47 = vmul.f32 %v1421_v8, %v1073_v12  ;;  %v1080_v15 = vmul.f32 %v1423_v14, %v1068_v9  ;;  %vm1086_vm2 = vweird.f32 %v1423_v14  ;;  %v556_v12 = vpop.xlane.xlu1 %555 }
 0x9ec   :  { %vm1087_vm4 = vmor %vm1085_vm3, %vm1086_vm2 }
 0x9ed   :  { %v1078_v17 = vsel %vm1077_vm1, %v1421_v8, %v1074_v47  ;;  %v1081_v19 = vmul.f32 %v1423_v14, %v1080_v15  ;;  %v549_v8 = vadd.f32 %v1702_v18, %v1639_v24  ;;  %v558_v18 = vmul.f32 %v556_v12, %v1615_v36 }
 0x9ee   :  { %v1089_v20 = vmul.f32 %v1078_v17, %v1055_v23 }
 0x9ef   :  { %v1082_v22 = vmul.f32 0.5, %v1081_v19  ;;  %v551_v9 = vsel %vm193_vm12, %v549_v8, 0.0 }
 0x9f0   :  { %v1092_v25 = vmul.f32 %v1371_v16, %v1089_v20 }
 0x9f1   :  { %v1083_v26 = vsub.f32 1.5, %v1082_v22 }
 0x9f2   :  { %v1102_v28 = vpop.permute.xlu0 %1101  ;;  %v1095_v29 = vadd.f32 %v1372_v21, %v1092_v25 }
 0x9f3   :  { %v1084_v30 = vmul.f32 %v1423_v14, %v1083_v26  ;;  %1331 = vmatpush.msk.msrb.mxu2 %vm200_vm11, %v1102_v28 }
 0x9f4   :  { %1332 = vmatmul.msk.f32.vlgmr.msrb.gmra.mxu2 %vm193_vm12, %v1095_v29 }
 0x9f5   :  { %v1088_v31 = vsel %vm1087_vm4, %v1423_v14, %v1084_v30 }
 0x9f6   :  { %v1090_v32 = vmul.f32 %v1088_v31, %v1056_v56 }
 0x9f7   :  { %v855_v53 = vpop.f32.mrf.mxu2 }
 0x9f8   :  { %v1093_v33 = vmul.f32 %v1371_v16, %v1090_v32  ;;  %v856_v3 = vadd.f32 %v1373_v54, %v855_v53 }
 0x9fa   :  { %v1096_v34 = vadd.f32 %v1372_v21, %v1093_v33  ;;  %v861_v6 = vadd.f32 %v856_v3, %v1691_v55  ;;  %v1759_v21 = vsub.f32 %v1713_v50, %v558_v18 }
 0x9fc   :  { %1333 = vmatmul.msk.f32.gmra.mxu2 %vm193_vm12, %v1096_v34  ;;  %v863_v7 = vsel %vm193_vm12, %v861_v6, 0.0  ;;  %v562_v30 = vmul.f32 %v1759_v21, %v1759_v21 }
 0x9fe   :  { %v566_v50 = vsel %vm193_vm12, %v562_v30, 0.0 }
 0x9ff   :  { %v858_v52 = vpop.f32.mrf.mxu2 }
 0xa00   :  { %v859_v59 = vadd.f32 %v1373_v54, %v858_v52 }
 0xa02   :  { %v862_v0 = vadd.f32 %v859_v59, %v1696_v13 }
 0xa04   :  { %v866_v58 = vsel %vm193_vm12, %v862_v0, 0.0 }
 0xa77   :  { %v1131_v42 = vpop.f32.mrf.mxu2 }
 0xa78   :  { %v1132_v43 = vadd.f32 %v1131_v42, %v1104_v40 }
 0xa7a   :  { %v1137_v44 = vmax.f32 %v1132_v43, 0.0 }
 0xa7c   :  { %1334 = vmatmul.msk.f32.vlgmr.msrb.gmra.mxu3 %vm287_vm13, %v1137_v44 }
 0xa7f   :  { %v1134_v23 = vpop.f32.mrf.mxu2 }
 0xa80   :  { %v1135_v45 = vadd.f32 %v1134_v23, %v1104_v40 }
 0xa82   :  { %v1138_v38 = vmax.f32 %v1135_v45, 0.0 }
 0xa84   :  { %1335 = vmatmul.msk.f32.gmra.mxu3 %vm287_vm13, %v1138_v38 }
 0xaff   :  { %v1163_v48 = vpop.f32.mrf.mxu3 }
 0xb00   :  { %v1164_v56 = vadd.f32 %v1374_v46, %v1163_v48 }
 0xb02   :  { %v1169_v57 = vadd.f32 %v1164_v56, %v1095_v29 }
 0xb04   :  { %v1171_v62 = vsel %vm193_vm12, %v1169_v57, 0.0 }
 0xb05   :  { %1172 = vadd.xlane.f32.xlu2 %v1171_v62 }
 0xb07   :  { %v1166_v63 = vpop.f32.mrf.mxu3 }
 0xb08   :  { %v1167_v60 = vadd.f32 %v1374_v46, %v1166_v63 }
 0xb0a   :  { %v1170_v2 = vadd.f32 %v1167_v60, %v1096_v34 }
 0xb0c   :  { %v1174_v61 = vsel %vm193_vm12, %v1170_v2, 0.0 }
 0xb0d   :  { %1175 = vadd.xlane.f32.xlu0 %v1174_v61  ;;  %867 = vadd.xlane.f32.xlu2 %v866_v58 }
 0xb15   :  { %864 = vadd.xlane.f32.xlu2 %v863_v7 }
 0xb1d   :  { %552 = vadd.xlane.f32.xlu2 %v551_v9 }
 0xb78   :  { %v1173_v13 = vpop.xlane.xlu2 %1172 }
 0xb79   :  { %v1177_v10 = vmul.f32 %v1173_v13, %v1615_v36 }
 0xb7b   :  { %v1742_v1 = vsub.f32 %v1169_v57, %v1177_v10 }
 0xb7d   :  { %v1181_v11 = vmul.f32 %v1742_v1, %v1742_v1 }
 0xb7f   :  { %v1183_v55 = vsel %vm193_vm12, %v1181_v11, 0.0 }
 0xb80   :  { %v1176_v14 = vpop.xlane.xlu0 %1175  ;;  %1184 = vadd.xlane.f32.xlu2 %v1183_v55  ;;  %v868_v47 = vpop.xlane.xlu2 %867 }
 0xb81   :  { %v1178_v15 = vmul.f32 %v1176_v14, %v1615_v36  ;;  %v870_v24 = vmul.f32 %v868_v47, %v1615_v36 }
 0xb83   :  { %v1750_v16 = vsub.f32 %v1170_v2, %v1178_v15  ;;  %v1752_v17 = vsub.f32 %v862_v0, %v870_v24 }
 0xb85   :  { %v1182_v19 = vmul.f32 %v1750_v16, %v1750_v16  ;;  %v874_v20 = vmul.f32 %v1752_v17, %v1752_v17 }
 0xb87   :  { %v1186_v22 = vsel %vm193_vm12, %v1182_v19, 0.0  ;;  %v878_v25 = vsel %vm193_vm12, %v874_v20, 0.0 }
 0xb88   :  { %1187 = vadd.xlane.f32.xlu2 %v1186_v22  ;;  %879 = vadd.xlane.f32.xlu0 %v878_v25  ;;  %v865_v26 = vpop.xlane.xlu2 %864 }
 0xb89   :  { %v869_v28 = vmul.f32 %v865_v26, %v1615_v36  ;;  %v1375_v26 = vld [vmem:[#allocation2 + $0x120] ss:$0 sm:$0xff] }
 0xb8b   :  { %v1764_v29 = vsub.f32 %v861_v6, %v869_v28 }
 0xb8d   :  { %v873_v31 = vmul.f32 %v1764_v29, %v1764_v29 }
 0xb8f   :  { %v875_v32 = vsel %vm193_vm12, %v873_v31, 0.0 }
 0xb90   :  { %567 = vadd.xlane.f32.xlu0 %v566_v50  ;;  %876 = vadd.xlane.f32.xlu2 %v875_v32  ;;  %v553_v33 = vpop.xlane.xlu2 %552 }
 0xb91   :  { %v557_v34 = vmul.f32 %v553_v33, %v1615_v36 }
 0xb93   :  { %v1773_v35 = vsub.f32 %v549_v8, %v557_v34  ;;  %v1377_v34 = vld [vmem:[#allocation2 + $0x11a] ss:$0 sm:$0xff] }
 0xb95   :  { %v561_v37 = vmul.f32 %v1773_v35, %v1773_v35 }
 0xb97   :  { %v563_v39 = vsel %vm193_vm12, %v561_v37, 0.0 }
 0xb98   :  { %564 = vadd.xlane.f32.xlu2 %v563_v39 }
 0xbf3   :  { %v1185_v53 = vpop.xlane.xlu2 %1184 }
 0xbf4   :  { %v1189_v52 = vmul.f32 %v1185_v53, %v1615_v36 }
 0xbf6   :  { %v1191_v40 = vadd.f32 1e-05, %v1189_v52 }
 0xbf8   :  { %1424 = vrsqrt.f32 %v1191_v40  ;;  %vm1199_vm13 = vweird.f32 %v1191_v40 }
 0xbfb   :  { %v880_v42 = vpop.xlane.xlu0 %879  ;;  %v1188_v43 = vpop.xlane.xlu2 %1187 }
 0xbfc   :  { %v882_v44 = vmul.f32 %v880_v42, %v1615_v36  ;;  %v1190_v23 = vmul.f32 %v1188_v43, %v1615_v36  ;;  %v1376_v43 = vld [vmem:[#allocation2 + $0x121] ss:$0 sm:$0xff] }
 0xbfe   :  { %v1425_v45 = vpop.eup %1424  ;;  %v884_v38 = vadd.f32 1e-05, %v882_v44  ;;  %v1192_v46 = vadd.f32 1e-05, %v1190_v23  ;;  %v1223_v44 = vld [vmem:[#allocation2 + $0xd0] sm:$0xff]  ;;  %v1224_v23 = vld [vmem:[#allocation2 + $0xd8] sm:$0xff] }
 0xbff   :  { %v1194_v48 = vmul.f32 %v1425_v45, %v1191_v40  ;;  %vm1200_vm11 = vweird.f32 %v1425_v45 }
 0xc00   :  { %1426 = vrsqrt.f32 %v884_v38  ;;  %vm1789_vm5 = vmor %vm1199_vm13, %vm1200_vm11  ;;  %vm901_vm7 = vweird.f32 %v884_v38  ;;  %vm1209_vm8 = vweird.f32 %v1192_v46 }
 0xc01   :  { %v1195_v56 = vmul.f32 %v1425_v45, %v1194_v48  ;;  %1428 = vrsqrt.f32 %v1192_v46 }
 0xc03   :  { %v1196_v54 = vmul.f32 0.5, %v1195_v56  ;;  %v568_v57 = vpop.xlane.xlu0 %567  ;;  %v877_v59 = vpop.xlane.xlu2 %876  ;;  %v1378_v56 = vld [vmem:[#allocation2 + $0x11b] ss:$0 sm:$0xff] }
 0xc04   :  { %v570_v62 = vmul.f32 %v568_v57, %v1615_v36  ;;  %v881_v63 = vmul.f32 %v877_v59, %v1615_v36 }
 0xc05   :  { %v1197_v60 = vsub.f32 1.5, %v1196_v54 }
 0xc06   :  { %v1427_v0 = vpop.eup %1426  ;;  %v1783_v2 = vadd.f32 1e-05, %v570_v62  ;;  %v1785_v3 = vadd.f32 1e-05, %v881_v63  ;;  %v1379_v63 = vld [vmem:[#allocation2 + $0x114] ss:$0 sm:$0xff] }
 0xc07   :  { %v1429_v61 = vpop.eup %1428  ;;  %v896_v58 = vmul.f32 %v1427_v0, %v884_v38  ;;  %v1198_v7 = vmul.f32 %v1425_v45, %v1197_v60  ;;  %vm902_vm0 = vweird.f32 %v1427_v0 }
 0xc08   :  { %v1204_v6 = vmul.f32 %v1429_v61, %v1192_v46  ;;  %1430 = vrsqrt.f32 %v1783_v2  ;;  %vm1210_vm6 = vweird.f32 %v1429_v61  ;;  %vm903_vm9 = vmor %vm901_vm7, %vm902_vm0  ;;  %v1470_v46 = vmov 0  }
 0xc09   :  { %v897_v8 = vmul.f32 %v1427_v0, %v896_v58  ;;  %1432 = vrsqrt.f32 %v1785_v3  ;;  %v1202_v14 = vsel %vm1789_vm5, %v1425_v45, %v1198_v7  ;;  %vm1211_vm10 = vmor %vm1209_vm8, %vm1210_vm6  ;;  %1359 = vset.pattern.permute.xlu0 %v1470_v46  ;;  %1360 = vset.pattern.permute.xlu2 %v1470_v46  ;;  %vm589_vm1 = vweird.f32 %v1783_v2 }
 0xc0a   :  { %v1205_v9 = vmul.f32 %v1429_v61, %v1204_v6  ;;  %v1213_v28 = vmul.f32 %v1202_v14, %v1742_v1  ;;  %1227 = vperm.xlu0 %1359, %v1223_v44   ;;  %1232 = vperm.xlu2 %1360, %v1224_v23   ;;  %vm891_vm3 = vweird.f32 %v1785_v3  ;;  %vm1235_vm0 = vcmask 523264   ;;  %v1222_v14 = vld [vmem:[#allocation2 + $0xc8] sm:$0xff] }
 0xc0b   :  { %v898_v13 = vmul.f32 0.5, %v897_v8  ;;  %v565_v10 = vpop.xlane.xlu2 %564  ;;  %v1380_v8 = vld [vmem:[#allocation2 + $0x115] ss:$0 sm:$0xff] }
 0xc0c   :  { %v1206_v12 = vmul.f32 0.5, %v1205_v9  ;;  %v569_v55 = vmul.f32 %v565_v10, %v1615_v36  ;;  %v1216_v52 = vmul.f32 %v1375_v26, %v1213_v28 }
 0xc0d   :  { %v899_v47 = vsub.f32 1.5, %v898_v13 }
 0xc0e   :  { %v1431_v15 = vpop.eup %1430  ;;  %v1207_v24 = vsub.f32 1.5, %v1206_v12  ;;  %v1796_v18 = vadd.f32 1e-05, %v569_v55  ;;  %v1219_v62 = vadd.f32 %v1376_v43, %v1216_v52 }
 0xc0f   :  { %v1433_v19 = vpop.eup %1432  ;;  %v900_v20 = vmul.f32 %v1427_v0, %v899_v47  ;;  %v584_v22 = vmul.f32 %v1431_v15, %v1783_v2  ;;  %vm590_vm14 = vweird.f32 %v1431_v15 }
 0xc10   :  { %v1208_v25 = vmul.f32 %v1429_v61, %v1207_v24  ;;  %v886_v36 = vmul.f32 %v1433_v19, %v1785_v3  ;;  %1434 = vrsqrt.f32 %v1796_v18  ;;  %vm892_vm15 = vweird.f32 %v1433_v19  ;;  %vm591_vm2 = vmor %vm589_vm1, %vm590_vm14 }
 0xc11   :  { %v904_v30 = vsel %vm903_vm9, %v1427_v0, %v900_v20  ;;  %v585_v31 = vmul.f32 %v1431_v15, %v584_v22  ;;  %vm893_vm4 = vmor %vm891_vm3, %vm892_vm15  ;;  %vm579_vm13 = vweird.f32 %v1796_v18 }
 0xc12   :  { %v1212_v50 = vsel %vm1211_vm10, %v1429_v61, %v1208_v25  ;;  %v887_v32 = vmul.f32 %v1433_v19, %v886_v36  ;;  %v906_v33 = vmul.f32 %v904_v30, %v1752_v17 }
 0xc13   :  { %v1214_v37 = vmul.f32 %v1212_v50, %v1750_v16  ;;  %v586_v39 = vmul.f32 0.5, %v585_v31 }
 0xc14   :  { %v888_v53 = vmul.f32 0.5, %v887_v32  ;;  %v909_v38 = vmul.f32 %v1377_v34, %v906_v33 }
 0xc15   :  { %v587_v40 = vsub.f32 1.5, %v586_v39  ;;  %v1217_v42 = vmul.f32 %v1375_v26, %v1214_v37 }
 0xc16   :  { %v1435_v1 = vpop.eup %1434  ;;  %v889_v45 = vsub.f32 1.5, %v888_v53  ;;  %v912_v61 = vadd.f32 %v1378_v56, %v909_v38 }
 0xc17   :  { %v588_v17 = vmul.f32 %v1431_v15, %v587_v40  ;;  %v574_v16 = vmul.f32 %v1435_v1, %v1796_v18  ;;  %v1220_v48 = vadd.f32 %v1376_v43, %v1217_v42  ;;  %vm580_vm11 = vweird.f32 %v1435_v1  ;;  %v1381_v18 = vld [vmem:[#allocation2 + $0x124] ss:$0 sm:$0xff] }
 0xc18   :  { %v890_v54 = vmul.f32 %v1433_v19, %v889_v45  ;;  %vm581_vm5 = vmor %vm579_vm13, %vm580_vm11 }
 0xc19   :  { %v592_v57 = vsel %vm591_vm2, %v1431_v15, %v588_v17  ;;  %v575_v59 = vmul.f32 %v1435_v1, %v574_v16  ;;  %1250 = vmatpush.msrb.mxu0 %v1220_v48 }
 0xc1a   :  { %v894_v60 = vsel %vm893_vm4, %v1433_v19, %v890_v54  ;;  %v594_v0 = vmul.f32 %v592_v57, %v1759_v21  ;;  %v1436_v19 = vld [vmem:[#allocation2 + $0x123] ss:$0 sm:$0xff] }
 0xc1b   :  { %v576_v2 = vmul.f32 0.5, %v575_v59  ;;  %1251 = vmatpush.msrb.mxu0 %v1219_v62  ;;  %v905_v58 = vmul.f32 %v894_v60, %v1764_v29  ;;  %v1221_v29 = vld [vmem:[#allocation2 + $0xc0] sm:$0xff] }
 0xc1c   :  { %v597_v3 = vmul.f32 %v1379_v63, %v594_v0 }
 0xc1d   :  { %v577_v6 = vsub.f32 1.5, %v576_v2  ;;  %1252 = vmatpush.msrb.mxu0 %v912_v61  ;;  %v908_v7 = vmul.f32 %v1377_v34, %v905_v58 }
 0xc1e   :  { %v600_v11 = vadd.f32 %v1380_v8, %v597_v3 }
 0xc1f   :  { %v578_v9 = vmul.f32 %v1435_v1, %v577_v6  ;;  %v911_v13 = vadd.f32 %v1378_v56, %v908_v7 }
 0xc21   :  { %v582_v10 = vsel %vm581_vm5, %v1435_v1, %v578_v9  ;;  %1253 = vmatpush.msrb.mxu0 %v911_v13 }
 0xc22   :  { %v593_v21 = vmul.f32 %v582_v10, %v1773_v35 }
 0xc23   :  { %1254 = vmatpush.msrb.mxu0 %v600_v11 }
 0xc24   :  { %v596_v12 = vmul.f32 %v1379_v63, %v593_v21 }
 0xc26   :  { %v599_v55 = vadd.f32 %v1380_v8, %v596_v12 }
 0xc28   :  { %1255 = vmatpush.msrb.mxu0 %v599_v55 }
 0xc2a   :  { %1256 = vmatpush.msrb.mxu0 %v1541_v51 }
 0xc2c   :  { %1257 = vmatpush.msrb.mxu0 %v1532_v49 }
 0xc2d   :  { %1336 = vmatmul.msk.f32.vlgmr.msrb.gmra.mxu0 %vm1235_vm0, %v1221_v29 }
 0xc35   :  { %1337 = vmatmul.msk.f32.gmra.mxu0 %vm1235_vm0, %v1222_v14 }
 0xc64   :  { %v1233_v22 = vpop.permute.xlu2 %1232 }
 0xc7c   :  { %v1228_v47 = vpop.permute.xlu0 %1227 }
 0xcaa   :  { %v1259_v15 = vpop.f32.mrf.mxu0 }
 0xcab   :  { %v1260_v24 = vadd.f32 %v1259_v15, %v1228_v47 }
 0xcad   :  { %v1265_v20 = vsub.f32 %v1260_v24, %v1436_v19 }
 0xcaf   :  { %v1268_v35 = vmul.f32 %v1381_v18, %v1265_v20 }
 0xcb1   :  { %v1270_v25 = vmul.f32 %v1268_v35, %v1510_v27 }
 0xcb2   :  { %v1262_v36 = vpop.f32.mrf.mxu0 }
 0xcb3   :  { %v1272_v51 = vadd.f32 %v1270_v25, %v1504_v5  ;;  %v1263_v26 = vadd.f32 %v1262_v36, %v1233_v22 }
 0xcb5   :  { %1274 = vst.msk [vmem:[%s1830_s3] sm:$0xff] %vm193_vm12, %v1272_v51  ;;  %v1266_v49 = vsub.f32 %v1263_v26, %v1436_v19 }
 0xcb7   :  { %v1269_v28 = vmul.f32 %v1381_v18, %v1266_v49 }
 0xcb9   :  { %v1271_v30 = vmul.f32 %v1269_v28, %v1512_v41 }
 0xcbb   :  { %v1273_v31 = vadd.f32 %v1271_v30, %v1502_v4 }
 0xcbd   :  { %1275 = vst.msk [vmem:[%s1830_s3 + $0x8] sm:$0xff] %vm193_vm12, %v1273_v31 }
 0xcbe   :  { %1280 = vsyncpa [#allocation3], 1 }

</bundles_post_ra>
